<compile_context>
chip_gen: v6e
topology: v6e:2x2x1
jax: 0.10.0
libtpu: 0.0.40
codegen_flags: <defaults>
</compile_context>

<pallas_src>
import math

import jax
import jax.numpy as jnp
from jax.experimental import pallas as pl
from jax.experimental.pallas import tpu as pltpu  # noqa: F401  (TPU-specific tuning hooks)

# ---------------- scaled-down ViT-B/16 style config ----------------
B = 2              # batch
C = 3              # RGB channels (ViTConfig.num_channels)
IMG = 16           # image height / width
P = 8              # patch size
NP = (IMG // P) ** 2        # number of patches = 4
S = NP + 1                  # sequence length incl. CLS = 5
H = 32             # hidden size
NH = 4             # attention heads
DH = H // NH       # head dim = 8
FF = 4 * H         # MLP intermediate size = 128
L = 2              # encoder layers
NUM_LABELS = 2
EPS = 1e-12        # ViTConfig.layer_norm_eps

BS = B * S
CPP = C * P * P
NEG = -1e30        # additive mask value; only safe because scores stay f32


# ---------------- in-kernel math helpers ----------------
def _layernorm(x, g, b):
    # torch.nn.LayerNorm semantics: biased variance over last axis, eps inside sqrt
    mu = jnp.mean(x, axis=-1, keepdims=True)
    var = jnp.mean(jnp.square(x - mu), axis=-1, keepdims=True)
    return (x - mu) * jax.lax.rsqrt(var + EPS) * g + b


def _gelu_tanh(x):
    # TODO(synk): HF ViT default is exact erf GELU; tanh approximation used (EUP tanh).
    c = math.sqrt(2.0 / math.pi)
    return 0.5 * x * (1.0 + jnp.tanh(c * (x + 0.044715 * x * x * x)))


# ---------------- fused forward kernel ----------------
def vit_kernel(patches_ref, add_ref, mask_ref, wp_ref,
               ln1g_ref, ln1b_ref, wqkv_ref, bqkv_ref, wo_ref, bo_ref,
               ln2g_ref, ln2b_ref, wi_ref, bi_ref, wf_ref, bf_ref,
               lng_ref, lnb_ref, wc_ref, bc_ref,
               out_ref):
    f32 = jnp.float32
    bf16 = jnp.bfloat16

    # ---- patch embedding: stride-P conv folded into one matmul ----
    # CLS rows of the patch slab are zero; cls+pos[0] and conv-bias+pos[1+p]
    # arrive pre-summed in add_ref, so no concat / interleave is needed.
    x = jnp.dot(patches_ref[...].astype(bf16), wp_ref[...],
                preferred_element_type=f32) + add_ref[...]          # (BS, H) f32

    mask = mask_ref[...]                                            # (BS, BS) additive f32

    # ---- encoder layers (static unrolled; all weights VMEM-resident) ----
    for l in range(L):
        # --- self-attention block (pre-LN) ---
        xn = _layernorm(x, ln1g_ref[l], ln1b_ref[l]).astype(bf16)   # (BS, H)
        # fused QKV projection; 1/sqrt(DH) already folded into the Q columns.
        qkv = jnp.dot(xn, wqkv_ref[l],
                      preferred_element_type=f32) + bqkv_ref[l]     # (BS, 3H) f32

        ctx_heads = []
        for h in range(NH):                                         # static, NH = 4
            qh = qkv[:, h * DH:(h + 1) * DH].astype(bf16)           # (BS, DH)
            kh = qkv[:, H + h * DH:H + (h + 1) * DH].astype(bf16)
            vh = qkv[:, 2 * H + h * DH:2 * H + (h + 1) * DH].astype(bf16)
            s = jnp.einsum('qd,kd->qk', qh, kh,
                           preferred_element_type=f32) + mask       # (BS, BS) f32
            m = jnp.max(s, axis=-1, keepdims=True)
            e = jnp.exp(s - m)
            p = e * pl.reciprocal(jnp.sum(e, axis=-1, keepdims=True), approx=True)
            ctx_heads.append(jnp.dot(p.astype(bf16), vh,
                                     preferred_element_type=f32))   # (BS, DH)
        ctx = jnp.concatenate(ctx_heads, axis=1)                    # (BS, H) head concat
        attn = jnp.dot(ctx.astype(bf16), wo_ref[l],
                       preferred_element_type=f32) + bo_ref[l]      # (BS, H)
        x = x + attn                                                # residual (dropout = identity)

        # --- MLP block ---
        xn2 = _layernorm(x, ln2g_ref[l], ln2b_ref[l]).astype(bf16)
        inter = _gelu_tanh(jnp.dot(xn2, wi_ref[l],
                                   preferred_element_type=f32) + bi_ref[l])   # (BS, FF) f32
        ffn = jnp.dot(inter.astype(bf16), wf_ref[l],
                      preferred_element_type=f32) + bf_ref[l]       # (BS, H)
        x = x + ffn

    # ---- final LN + classifier on the CLS rows (contiguous slice, CLS-first) ----
    cls_n = _layernorm(x[0:B, :], lng_ref[...], lnb_ref[...])       # (B, H)
    out_ref[...] = jnp.dot(cls_n.astype(bf16), wc_ref[...],
                           preferred_element_type=f32) + bc_ref[...]


# ---------------- wrapper: layout glue + single pallas_call ----------------
def _prep_params(params):
    """Stack per-layer weights, fuse Q/K/V, fold the attention scale, cast matmul weights bf16."""
    bf16 = jnp.bfloat16
    layers = params["layers"]

    def stack(i):
        return jnp.stack([lp[i] for lp in layers])

    scale = 1.0 / math.sqrt(DH)
    ln1g, ln1b = stack(0), stack(1)                                         # (L, 1, H)
    # fused QKV (Q | K | V along the output axis); scale folded into Q part
    wqkv = jnp.concatenate([stack(2) * scale, stack(4), stack(6)], axis=2).astype(bf16)  # (L, H, 3H)
    bqkv = jnp.concatenate([stack(3) * scale, stack(5), stack(7)], axis=2)               # (L, 1, 3H)
    wo = stack(8).astype(bf16)                                              # (L, H, H)
    bo = stack(9)                                                           # (L, 1, H)
    ln2g, ln2b = stack(10), stack(11)                                       # (L, 1, H)
    wi, bi = stack(12).astype(bf16), stack(13)                              # (L, H, FF), (L, 1, FF)
    wf, bfc = stack(14).astype(bf16), stack(15)                             # (L, FF, H), (L, 1, H)
    return (ln1g, ln1b, wqkv, bqkv, wo, bo, ln2g, ln2b, wi, bi, wf, bfc)


def vit_forward(pixel_values, params):
    # pixel_values: (B, C, IMG, IMG) NCHW float32.  Everything below is layout
    # glue done once outside the kernel.
    nhp = IMG // P
    # patchify: (B*NP, C*P*P), pixel order (c, dy, dx) — same as flattened
    # torch Conv2d(P, stride=P) weights.
    patches = pixel_values.reshape(B, C, nhp, P, nhp, P)
    patches = patches.transpose(0, 2, 4, 1, 3, 5).reshape(B * NP, CPP)
    # CLS-first slab: rows 0..B-1 carry zero patches (their embedding comes
    # entirely from add_slab below).
    patches_padded = jnp.concatenate(
        [jnp.zeros((B, CPP), patches.dtype), patches], axis=0)             # (BS, CPP)

    # additive embedding slab: CLS rows get cls+pos[0]; patch rows get bp+pos[1+p].
    cls_row = params["cls"] + params["pos"][0:1, :]                         # (1, H)
    patch_add = params["bp"] + params["pos"][1:, :]                         # (NP, H)
    add_slab = jnp.concatenate(
        [jnp.tile(cls_row, (B, 1)), jnp.tile(patch_add, (B, 1))], axis=0)   # (BS, H)

    # block-diagonal additive mask for the CLS-first segment layout (f32 only:
    # NEG would overflow in bf16; scores are kept f32 in the kernel).
    idx = jnp.arange(BS)
    seg = jnp.where(idx < B, idx, (idx - B) // NP)
    mask = jnp.where(seg[:, None] == seg[None, :], 0.0, NEG).astype(jnp.float32)

    args = (patches_padded, add_slab, mask, params["wp"].astype(jnp.bfloat16)) \
        + _prep_params(params) \
        + (params["lng"], params["lnb"],
           params["wc"].astype(jnp.bfloat16), params["bc"])

    # single launch, no grid: every operand is one whole-array VMEM block (~150 KB).
    logits = pl.pallas_call(
        vit_kernel,
        out_shape=jax.ShapeDtypeStruct((B, NUM_LABELS), jnp.float32),
    )(*args)
    return logits


# ---------------- deterministic parameter init ----------------
# Linear weights are stored as (in, out) (transposed vs. torch's (out, in)).
def init_params(key):
    keys = iter(jax.random.split(key, 64))

    def normal(shape):
        return 0.02 * jax.random.normal(next(keys), shape, dtype=jnp.float32)

    params = {
        "wp": normal((CPP, H)),                       # patch-conv folded to matmul
        "bp": jnp.zeros((1, H), jnp.float32),
        "cls": normal((1, H)),
        "pos": normal((S, H)),
        "layers": [],
        "lng": jnp.ones((1, H), jnp.float32),
        "lnb": jnp.zeros((1, H), jnp.float32),
        "wc": normal((H, NUM_LABELS)),
        "bc": jnp.zeros((1, NUM_LABELS), jnp.float32),
    }
    for _ in range(L):
        layer = (
            jnp.ones((1, H), jnp.float32), jnp.zeros((1, H), jnp.float32),   # layernorm_before
            normal((H, H)), jnp.zeros((1, H), jnp.float32),                  # query
            normal((H, H)), jnp.zeros((1, H), jnp.float32),                  # key
            normal((H, H)), jnp.zeros((1, H), jnp.float32),                  # value
            normal((H, H)), jnp.zeros((1, H), jnp.float32),                  # attention output dense
            jnp.ones((1, H), jnp.float32), jnp.zeros((1, H), jnp.float32),   # layernorm_after
            normal((H, FF)), jnp.zeros((1, FF), jnp.float32),                # intermediate dense
            normal((FF, H)), jnp.zeros((1, H), jnp.float32),                 # output dense
        )
        params["layers"].append(layer)
    return params


if __name__ == "__main__":
    root = jax.random.PRNGKey(0)
    pkey, xkey = jax.random.split(root)
    params = init_params(pkey)
    pixel_values = jax.random.normal(xkey, (B, C, IMG, IMG), dtype=jnp.float32)

    logits = jax.jit(vit_forward)(pixel_values, params)
    logits = jax.block_until_ready(logits)
    assert logits.shape == (B, NUM_LABELS) and logits.dtype == jnp.float32
    assert bool(jnp.all(jnp.isfinite(logits)))
    print("KERNEL_OK")
</pallas_src>

<mosaic_0001>
module attributes {stable_mosaic.version = 11 : i64} {
  func.func @vit_kernel(%arg0: memref<10x192xf32, #tpu.memory_space<vmem>>, %arg1: memref<10x32xf32, #tpu.memory_space<vmem>>, %arg2: memref<10x10xf32, #tpu.memory_space<vmem>>, %arg3: memref<192x32xbf16, #tpu.memory_space<vmem>>, %arg4: memref<2x1x32xf32, #tpu.memory_space<vmem>>, %arg5: memref<2x1x32xf32, #tpu.memory_space<vmem>>, %arg6: memref<2x32x96xbf16, #tpu.memory_space<vmem>>, %arg7: memref<2x1x96xf32, #tpu.memory_space<vmem>>, %arg8: memref<2x32x32xbf16, #tpu.memory_space<vmem>>, %arg9: memref<2x1x32xf32, #tpu.memory_space<vmem>>, %arg10: memref<2x1x32xf32, #tpu.memory_space<vmem>>, %arg11: memref<2x1x32xf32, #tpu.memory_space<vmem>>, %arg12: memref<2x32x128xbf16, #tpu.memory_space<vmem>>, %arg13: memref<2x1x128xf32, #tpu.memory_space<vmem>>, %arg14: memref<2x128x32xbf16, #tpu.memory_space<vmem>>, %arg15: memref<2x1x32xf32, #tpu.memory_space<vmem>>, %arg16: memref<1x32xf32, #tpu.memory_space<vmem>>, %arg17: memref<1x32xf32, #tpu.memory_space<vmem>>, %arg18: memref<32x2xbf16, #tpu.memory_space<vmem>>, %arg19: memref<1x2xf32, #tpu.memory_space<vmem>>, %arg20: memref<2x2xf32, #tpu.memory_space<vmem>>) attributes {dimension_semantics = [], scalar_prefetch = 0 : i64, scratch_operands = 0 : i64, tpu.core_type = #tpu.core_type<tc>} {
    %c0 = arith.constant 0 : index
    %c0_0 = arith.constant 0 : index
    %0 = vector.load %arg0[%c0, %c0_0] : memref<10x192xf32, #tpu.memory_space<vmem>>, vector<10x192xf32>
    %1 = arith.truncf %0 : vector<10x192xf32> to vector<10x192xbf16>
    %c0_1 = arith.constant 0 : index
    %c0_2 = arith.constant 0 : index
    %2 = vector.load %arg3[%c0_1, %c0_2] : memref<192x32xbf16, #tpu.memory_space<vmem>>, vector<192x32xbf16>
    %cst = arith.constant dense<0.000000e+00> : vector<10x32xf32>
    %3 = tpu.matmul %1, %2, %cst {dimension_numbers = #tpu.dot_dimension_numbers<[1], [0], [0], [1], [0, 0, 1, 1], [], []>} : vector<10x192xbf16>, vector<192x32xbf16>, vector<10x32xf32> -> vector<10x32xf32>
    %c0_3 = arith.constant 0 : index
    %c0_4 = arith.constant 0 : index
    %4 = vector.load %arg1[%c0_3, %c0_4] : memref<10x32xf32, #tpu.memory_space<vmem>>, vector<10x32xf32>
    %5 = arith.addf %3, %4 : vector<10x32xf32>
    %c0_5 = arith.constant 0 : index
    %c0_6 = arith.constant 0 : index
    %6 = vector.load %arg2[%c0_5, %c0_6] : memref<10x10xf32, #tpu.memory_space<vmem>>, vector<10x10xf32>
    %c0_7 = arith.constant 0 : index
    %c0_8 = arith.constant 0 : index
    %c0_9 = arith.constant 0 : index
    %7 = vector.load %arg4[%c0_7, %c0_8, %c0_9] : memref<2x1x32xf32, #tpu.memory_space<vmem>>, vector<1x1x32xf32>
    %8 = vector.shape_cast %7 : vector<1x1x32xf32> to vector<1x32xf32>
    %c0_10 = arith.constant 0 : index
    %c0_11 = arith.constant 0 : index
    %c0_12 = arith.constant 0 : index
    %9 = vector.load %arg5[%c0_10, %c0_11, %c0_12] : memref<2x1x32xf32, #tpu.memory_space<vmem>>, vector<1x1x32xf32>
    %10 = vector.shape_cast %9 : vector<1x1x32xf32> to vector<1x32xf32>
    %cst_13 = arith.constant dense<0.000000e+00> : vector<10xf32>
    %11 = vector.multi_reduction <add>, %5, %cst_13 [1] : vector<10x32xf32> to vector<10xf32>
    %12 = vector.shape_cast %11 : vector<10xf32> to vector<10x1xf32>
    %cst_14 = arith.constant 3.200000e+01 : f32
    %13 = vector.broadcast %cst_14 : f32 to vector<10x1xf32>
    %14 = arith.divf %12, %13 : vector<10x1xf32>
    %15 = vector.broadcast %14 : vector<10x1xf32> to vector<10x32xf32>
    %16 = arith.subf %5, %15 : vector<10x32xf32>
    %17 = arith.mulf %16, %16 : vector<10x32xf32>
    %cst_15 = arith.constant dense<0.000000e+00> : vector<10xf32>
    %18 = vector.multi_reduction <add>, %17, %cst_15 [1] : vector<10x32xf32> to vector<10xf32>
    %19 = vector.shape_cast %18 : vector<10xf32> to vector<10x1xf32>
    %cst_16 = arith.constant 3.200000e+01 : f32
    %20 = vector.broadcast %cst_16 : f32 to vector<10x1xf32>
    %21 = arith.divf %19, %20 : vector<10x1xf32>
    %22 = vector.broadcast %14 : vector<10x1xf32> to vector<10x32xf32>
    %23 = arith.subf %5, %22 : vector<10x32xf32>
    %cst_17 = arith.constant 9.99999996E-13 : f32
    %24 = vector.broadcast %cst_17 : f32 to vector<10x1xf32>
    %25 = arith.addf %21, %24 : vector<10x1xf32>
    %26 = math.rsqrt %25 : vector<10x1xf32>
    %27 = vector.broadcast %26 : vector<10x1xf32> to vector<10x32xf32>
    %28 = arith.mulf %23, %27 : vector<10x32xf32>
    %29 = vector.broadcast %8 : vector<1x32xf32> to vector<10x32xf32>
    %30 = arith.mulf %28, %29 : vector<10x32xf32>
    %31 = vector.broadcast %10 : vector<1x32xf32> to vector<10x32xf32>
    %32 = arith.addf %30, %31 : vector<10x32xf32>
    %33 = arith.truncf %32 : vector<10x32xf32> to vector<10x32xbf16>
    %c0_18 = arith.constant 0 : index
    %c0_19 = arith.constant 0 : index
    %c0_20 = arith.constant 0 : index
    %34 = vector.load %arg6[%c0_18, %c0_19, %c0_20] : memref<2x32x96xbf16, #tpu.memory_space<vmem>>, vector<1x32x96xbf16>
    %35 = vector.shape_cast %34 : vector<1x32x96xbf16> to vector<32x96xbf16>
    %cst_21 = arith.constant dense<0.000000e+00> : vector<10x96xf32>
    %36 = tpu.matmul %33, %35, %cst_21 {dimension_numbers = #tpu.dot_dimension_numbers<[1], [0], [0], [1], [0, 0, 1, 1], [], []>} : vector<10x32xbf16>, vector<32x96xbf16>, vector<10x96xf32> -> vector<10x96xf32>
    %c0_22 = arith.constant 0 : index
    %c0_23 = arith.constant 0 : index
    %c0_24 = arith.constant 0 : index
    %37 = vector.load %arg7[%c0_22, %c0_23, %c0_24] : memref<2x1x96xf32, #tpu.memory_space<vmem>>, vector<1x1x96xf32>
    %38 = vector.shape_cast %37 : vector<1x1x96xf32> to vector<1x96xf32>
    %39 = vector.broadcast %38 : vector<1x96xf32> to vector<10x96xf32>
    %40 = arith.addf %36, %39 : vector<10x96xf32>
    %41 = vector.extract_strided_slice %40 {offsets = [0, 0], sizes = [10, 8], strides = [1, 1]} : vector<10x96xf32> to vector<10x8xf32>
    %42 = arith.truncf %41 : vector<10x8xf32> to vector<10x8xbf16>
    %43 = vector.extract_strided_slice %40 {offsets = [0, 32], sizes = [10, 8], strides = [1, 1]} : vector<10x96xf32> to vector<10x8xf32>
    %44 = arith.truncf %43 : vector<10x8xf32> to vector<10x8xbf16>
    %45 = vector.extract_strided_slice %40 {offsets = [0, 64], sizes = [10, 8], strides = [1, 1]} : vector<10x96xf32> to vector<10x8xf32>
    %46 = arith.truncf %45 : vector<10x8xf32> to vector<10x8xbf16>
    "tpu.trace_start"() <{level = 10 : i32, message = "qd,kd->qk"}> : () -> ()
    %cst_25 = arith.constant dense<0.000000e+00> : vector<10x10xf32>
    %47 = tpu.matmul %42, %44, %cst_25 {dimension_numbers = #tpu.dot_dimension_numbers<[1], [1], [0], [0], [0, 0, 1, 0], [], []>} : vector<10x8xbf16>, vector<10x8xbf16>, vector<10x10xf32> -> vector<10x10xf32>
    "tpu.trace_stop"() : () -> ()
    %48 = arith.addf %47, %6 : vector<10x10xf32>
    %cst_26 = arith.constant dense<0xFF800000> : vector<10xf32>
    %49 = vector.multi_reduction <maximumf>, %48, %cst_26 [1] : vector<10x10xf32> to vector<10xf32>
    %50 = vector.shape_cast %49 : vector<10xf32> to vector<10x1xf32>
    %51 = vector.broadcast %50 : vector<10x1xf32> to vector<10x10xf32>
    %52 = arith.subf %48, %51 : vector<10x10xf32>
    %53 = math.exp %52 : vector<10x10xf32>
    %cst_27 = arith.constant dense<0.000000e+00> : vector<10xf32>
    %54 = vector.multi_reduction <add>, %53, %cst_27 [1] : vector<10x10xf32> to vector<10xf32>
    %55 = vector.shape_cast %54 : vector<10xf32> to vector<10x1xf32>
    %56 = tpu.reciprocal %55 {approx = true} : vector<10x1xf32> -> vector<10x1xf32>
    %57 = vector.broadcast %56 : vector<10x1xf32> to vector<10x10xf32>
    %58 = arith.mulf %53, %57 : vector<10x10xf32>
    %59 = arith.truncf %58 : vector<10x10xf32> to vector<10x10xbf16>
    %cst_28 = arith.constant dense<0.000000e+00> : vector<10x8xf32>
    %60 = tpu.matmul %59, %46, %cst_28 {dimension_numbers = #tpu.dot_dimension_numbers<[1], [0], [0], [1], [0, 0, 1, 1], [], []>} : vector<10x10xbf16>, vector<10x8xbf16>, vector<10x8xf32> -> vector<10x8xf32>
    %61 = vector.extract_strided_slice %40 {offsets = [0, 8], sizes = [10, 8], strides = [1, 1]} : vector<10x96xf32> to vector<10x8xf32>
    %62 = arith.truncf %61 : vector<10x8xf32> to vector<10x8xbf16>
    %63 = vector.extract_strided_slice %40 {offsets = [0, 40], sizes = [10, 8], strides = [1, 1]} : vector<10x96xf32> to vector<10x8xf32>
    %64 = arith.truncf %63 : vector<10x8xf32> to vector<10x8xbf16>
    %65 = vector.extract_strided_slice %40 {offsets = [0, 72], sizes = [10, 8], strides = [1, 1]} : vector<10x96xf32> to vector<10x8xf32>
    %66 = arith.truncf %65 : vector<10x8xf32> to vector<10x8xbf16>
    "tpu.trace_start"() <{level = 10 : i32, message = "qd,kd->qk"}> : () -> ()
    %cst_29 = arith.constant dense<0.000000e+00> : vector<10x10xf32>
    %67 = tpu.matmul %62, %64, %cst_29 {dimension_numbers = #tpu.dot_dimension_numbers<[1], [1], [0], [0], [0, 0, 1, 0], [], []>} : vector<10x8xbf16>, vector<10x8xbf16>, vector<10x10xf32> -> vector<10x10xf32>
    "tpu.trace_stop"() : () -> ()
    %68 = arith.addf %67, %6 : vector<10x10xf32>
    %cst_30 = arith.constant dense<0xFF800000> : vector<10xf32>
    %69 = vector.multi_reduction <maximumf>, %68, %cst_30 [1] : vector<10x10xf32> to vector<10xf32>
    %70 = vector.shape_cast %69 : vector<10xf32> to vector<10x1xf32>
    %71 = vector.broadcast %70 : vector<10x1xf32> to vector<10x10xf32>
    %72 = arith.subf %68, %71 : vector<10x10xf32>
    %73 = math.exp %72 : vector<10x10xf32>
    %cst_31 = arith.constant dense<0.000000e+00> : vector<10xf32>
    %74 = vector.multi_reduction <add>, %73, %cst_31 [1] : vector<10x10xf32> to vector<10xf32>
    %75 = vector.shape_cast %74 : vector<10xf32> to vector<10x1xf32>
    %76 = tpu.reciprocal %75 {approx = true} : vector<10x1xf32> -> vector<10x1xf32>
    %77 = vector.broadcast %76 : vector<10x1xf32> to vector<10x10xf32>
    %78 = arith.mulf %73, %77 : vector<10x10xf32>
    %79 = arith.truncf %78 : vector<10x10xf32> to vector<10x10xbf16>
    %cst_32 = arith.constant dense<0.000000e+00> : vector<10x8xf32>
    %80 = tpu.matmul %79, %66, %cst_32 {dimension_numbers = #tpu.dot_dimension_numbers<[1], [0], [0], [1], [0, 0, 1, 1], [], []>} : vector<10x10xbf16>, vector<10x8xbf16>, vector<10x8xf32> -> vector<10x8xf32>
    %81 = vector.extract_strided_slice %40 {offsets = [0, 16], sizes = [10, 8], strides = [1, 1]} : vector<10x96xf32> to vector<10x8xf32>
    %82 = arith.truncf %81 : vector<10x8xf32> to vector<10x8xbf16>
    %83 = vector.extract_strided_slice %40 {offsets = [0, 48], sizes = [10, 8], strides = [1, 1]} : vector<10x96xf32> to vector<10x8xf32>
    %84 = arith.truncf %83 : vector<10x8xf32> to vector<10x8xbf16>
    %85 = vector.extract_strided_slice %40 {offsets = [0, 80], sizes = [10, 8], strides = [1, 1]} : vector<10x96xf32> to vector<10x8xf32>
    %86 = arith.truncf %85 : vector<10x8xf32> to vector<10x8xbf16>
    "tpu.trace_start"() <{level = 10 : i32, message = "qd,kd->qk"}> : () -> ()
    %cst_33 = arith.constant dense<0.000000e+00> : vector<10x10xf32>
    %87 = tpu.matmul %82, %84, %cst_33 {dimension_numbers = #tpu.dot_dimension_numbers<[1], [1], [0], [0], [0, 0, 1, 0], [], []>} : vector<10x8xbf16>, vector<10x8xbf16>, vector<10x10xf32> -> vector<10x10xf32>
    "tpu.trace_stop"() : () -> ()
    %88 = arith.addf %87, %6 : vector<10x10xf32>
    %cst_34 = arith.constant dense<0xFF800000> : vector<10xf32>
    %89 = vector.multi_reduction <maximumf>, %88, %cst_34 [1] : vector<10x10xf32> to vector<10xf32>
    %90 = vector.shape_cast %89 : vector<10xf32> to vector<10x1xf32>
    %91 = vector.broadcast %90 : vector<10x1xf32> to vector<10x10xf32>
    %92 = arith.subf %88, %91 : vector<10x10xf32>
    %93 = math.exp %92 : vector<10x10xf32>
    %cst_35 = arith.constant dense<0.000000e+00> : vector<10xf32>
    %94 = vector.multi_reduction <add>, %93, %cst_35 [1] : vector<10x10xf32> to vector<10xf32>
    %95 = vector.shape_cast %94 : vector<10xf32> to vector<10x1xf32>
    %96 = tpu.reciprocal %95 {approx = true} : vector<10x1xf32> -> vector<10x1xf32>
    %97 = vector.broadcast %96 : vector<10x1xf32> to vector<10x10xf32>
    %98 = arith.mulf %93, %97 : vector<10x10xf32>
    %99 = arith.truncf %98 : vector<10x10xf32> to vector<10x10xbf16>
    %cst_36 = arith.constant dense<0.000000e+00> : vector<10x8xf32>
    %100 = tpu.matmul %99, %86, %cst_36 {dimension_numbers = #tpu.dot_dimension_numbers<[1], [0], [0], [1], [0, 0, 1, 1], [], []>} : vector<10x10xbf16>, vector<10x8xbf16>, vector<10x8xf32> -> vector<10x8xf32>
    %101 = vector.extract_strided_slice %40 {offsets = [0, 24], sizes = [10, 8], strides = [1, 1]} : vector<10x96xf32> to vector<10x8xf32>
    %102 = arith.truncf %101 : vector<10x8xf32> to vector<10x8xbf16>
    %103 = vector.extract_strided_slice %40 {offsets = [0, 56], sizes = [10, 8], strides = [1, 1]} : vector<10x96xf32> to vector<10x8xf32>
    %104 = arith.truncf %103 : vector<10x8xf32> to vector<10x8xbf16>
    %105 = vector.extract_strided_slice %40 {offsets = [0, 88], sizes = [10, 8], strides = [1, 1]} : vector<10x96xf32> to vector<10x8xf32>
    %106 = arith.truncf %105 : vector<10x8xf32> to vector<10x8xbf16>
    "tpu.trace_start"() <{level = 10 : i32, message = "qd,kd->qk"}> : () -> ()
    %cst_37 = arith.constant dense<0.000000e+00> : vector<10x10xf32>
    %107 = tpu.matmul %102, %104, %cst_37 {dimension_numbers = #tpu.dot_dimension_numbers<[1], [1], [0], [0], [0, 0, 1, 0], [], []>} : vector<10x8xbf16>, vector<10x8xbf16>, vector<10x10xf32> -> vector<10x10xf32>
    "tpu.trace_stop"() : () -> ()
    %108 = arith.addf %107, %6 : vector<10x10xf32>
    %cst_38 = arith.constant dense<0xFF800000> : vector<10xf32>
    %109 = vector.multi_reduction <maximumf>, %108, %cst_38 [1] : vector<10x10xf32> to vector<10xf32>
    %110 = vector.shape_cast %109 : vector<10xf32> to vector<10x1xf32>
    %111 = vector.broadcast %110 : vector<10x1xf32> to vector<10x10xf32>
    %112 = arith.subf %108, %111 : vector<10x10xf32>
    %113 = math.exp %112 : vector<10x10xf32>
    %cst_39 = arith.constant dense<0.000000e+00> : vector<10xf32>
    %114 = vector.multi_reduction <add>, %113, %cst_39 [1] : vector<10x10xf32> to vector<10xf32>
    %115 = vector.shape_cast %114 : vector<10xf32> to vector<10x1xf32>
    %116 = tpu.reciprocal %115 {approx = true} : vector<10x1xf32> -> vector<10x1xf32>
    %117 = vector.broadcast %116 : vector<10x1xf32> to vector<10x10xf32>
    %118 = arith.mulf %113, %117 : vector<10x10xf32>
    %119 = arith.truncf %118 : vector<10x10xf32> to vector<10x10xbf16>
    %cst_40 = arith.constant dense<0.000000e+00> : vector<10x8xf32>
    %120 = tpu.matmul %119, %106, %cst_40 {dimension_numbers = #tpu.dot_dimension_numbers<[1], [0], [0], [1], [0, 0, 1, 1], [], []>} : vector<10x10xbf16>, vector<10x8xbf16>, vector<10x8xf32> -> vector<10x8xf32>
    %121 = tpu.concatenate %60, %80, %100, %120 in 1 : vector<10x8xf32>, vector<10x8xf32>, vector<10x8xf32>, vector<10x8xf32> -> vector<10x32xf32>
    %122 = arith.truncf %121 : vector<10x32xf32> to vector<10x32xbf16>
    %c0_41 = arith.constant 0 : index
    %c0_42 = arith.constant 0 : index
    %c0_43 = arith.constant 0 : index
    %123 = vector.load %arg8[%c0_41, %c0_42, %c0_43] : memref<2x32x32xbf16, #tpu.memory_space<vmem>>, vector<1x32x32xbf16>
    %124 = vector.shape_cast %123 : vector<1x32x32xbf16> to vector<32x32xbf16>
    %cst_44 = arith.constant dense<0.000000e+00> : vector<10x32xf32>
    %125 = tpu.matmul %122, %124, %cst_44 {dimension_numbers = #tpu.dot_dimension_numbers<[1], [0], [0], [1], [0, 0, 1, 1], [], []>} : vector<10x32xbf16>, vector<32x32xbf16>, vector<10x32xf32> -> vector<10x32xf32>
    %c0_45 = arith.constant 0 : index
    %c0_46 = arith.constant 0 : index
    %c0_47 = arith.constant 0 : index
    %126 = vector.load %arg9[%c0_45, %c0_46, %c0_47] : memref<2x1x32xf32, #tpu.memory_space<vmem>>, vector<1x1x32xf32>
    %127 = vector.shape_cast %126 : vector<1x1x32xf32> to vector<1x32xf32>
    %128 = vector.broadcast %127 : vector<1x32xf32> to vector<10x32xf32>
    %129 = arith.addf %125, %128 : vector<10x32xf32>
    %130 = arith.addf %5, %129 : vector<10x32xf32>
    %c0_48 = arith.constant 0 : index
    %c0_49 = arith.constant 0 : index
    %c0_50 = arith.constant 0 : index
    %131 = vector.load %arg10[%c0_48, %c0_49, %c0_50] : memref<2x1x32xf32, #tpu.memory_space<vmem>>, vector<1x1x32xf32>
    %132 = vector.shape_cast %131 : vector<1x1x32xf32> to vector<1x32xf32>
    %c0_51 = arith.constant 0 : index
    %c0_52 = arith.constant 0 : index
    %c0_53 = arith.constant 0 : index
    %133 = vector.load %arg11[%c0_51, %c0_52, %c0_53] : memref<2x1x32xf32, #tpu.memory_space<vmem>>, vector<1x1x32xf32>
    %134 = vector.shape_cast %133 : vector<1x1x32xf32> to vector<1x32xf32>
    %cst_54 = arith.constant dense<0.000000e+00> : vector<10xf32>
    %135 = vector.multi_reduction <add>, %130, %cst_54 [1] : vector<10x32xf32> to vector<10xf32>
    %136 = vector.shape_cast %135 : vector<10xf32> to vector<10x1xf32>
    %cst_55 = arith.constant 3.200000e+01 : f32
    %137 = vector.broadcast %cst_55 : f32 to vector<10x1xf32>
    %138 = arith.divf %136, %137 : vector<10x1xf32>
    %139 = vector.broadcast %138 : vector<10x1xf32> to vector<10x32xf32>
    %140 = arith.subf %130, %139 : vector<10x32xf32>
    %141 = arith.mulf %140, %140 : vector<10x32xf32>
    %cst_56 = arith.constant dense<0.000000e+00> : vector<10xf32>
    %142 = vector.multi_reduction <add>, %141, %cst_56 [1] : vector<10x32xf32> to vector<10xf32>
    %143 = vector.shape_cast %142 : vector<10xf32> to vector<10x1xf32>
    %cst_57 = arith.constant 3.200000e+01 : f32
    %144 = vector.broadcast %cst_57 : f32 to vector<10x1xf32>
    %145 = arith.divf %143, %144 : vector<10x1xf32>
    %146 = vector.broadcast %138 : vector<10x1xf32> to vector<10x32xf32>
    %147 = arith.subf %130, %146 : vector<10x32xf32>
    %cst_58 = arith.constant 9.99999996E-13 : f32
    %148 = vector.broadcast %cst_58 : f32 to vector<10x1xf32>
    %149 = arith.addf %145, %148 : vector<10x1xf32>
    %150 = math.rsqrt %149 : vector<10x1xf32>
    %151 = vector.broadcast %150 : vector<10x1xf32> to vector<10x32xf32>
    %152 = arith.mulf %147, %151 : vector<10x32xf32>
    %153 = vector.broadcast %132 : vector<1x32xf32> to vector<10x32xf32>
    %154 = arith.mulf %152, %153 : vector<10x32xf32>
    %155 = vector.broadcast %134 : vector<1x32xf32> to vector<10x32xf32>
    %156 = arith.addf %154, %155 : vector<10x32xf32>
    %157 = arith.truncf %156 : vector<10x32xf32> to vector<10x32xbf16>
    %c0_59 = arith.constant 0 : index
    %c0_60 = arith.constant 0 : index
    %c0_61 = arith.constant 0 : index
    %158 = vector.load %arg12[%c0_59, %c0_60, %c0_61] : memref<2x32x128xbf16, #tpu.memory_space<vmem>>, vector<1x32x128xbf16>
    %159 = vector.shape_cast %158 : vector<1x32x128xbf16> to vector<32x128xbf16>
    %cst_62 = arith.constant dense<0.000000e+00> : vector<10x128xf32>
    %160 = tpu.matmul %157, %159, %cst_62 {dimension_numbers = #tpu.dot_dimension_numbers<[1], [0], [0], [1], [0, 0, 1, 1], [], []>} : vector<10x32xbf16>, vector<32x128xbf16>, vector<10x128xf32> -> vector<10x128xf32>
    %c0_63 = arith.constant 0 : index
    %c0_64 = arith.constant 0 : index
    %c0_65 = arith.constant 0 : index
    %161 = vector.load %arg13[%c0_63, %c0_64, %c0_65] : memref<2x1x128xf32, #tpu.memory_space<vmem>>, vector<1x1x128xf32>
    %162 = vector.shape_cast %161 : vector<1x1x128xf32> to vector<1x128xf32>
    %163 = vector.broadcast %162 : vector<1x128xf32> to vector<10x128xf32>
    %164 = arith.addf %160, %163 : vector<10x128xf32>
    %cst_66 = arith.constant 5.000000e-01 : f32
    %165 = vector.broadcast %cst_66 : f32 to vector<10x128xf32>
    %166 = arith.mulf %165, %164 : vector<10x128xf32>
    %cst_67 = arith.constant 4.471500e-02 : f32
    %167 = vector.broadcast %cst_67 : f32 to vector<10x128xf32>
    %168 = arith.mulf %167, %164 : vector<10x128xf32>
    %169 = arith.mulf %168, %164 : vector<10x128xf32>
    %170 = arith.mulf %169, %164 : vector<10x128xf32>
    %171 = arith.addf %164, %170 : vector<10x128xf32>
    %cst_68 = arith.constant 0.797884583 : f32
    %172 = vector.broadcast %cst_68 : f32 to vector<10x128xf32>
    %173 = arith.mulf %172, %171 : vector<10x128xf32>
    %174 = math.tanh %173 : vector<10x128xf32>
    %cst_69 = arith.constant 1.000000e+00 : f32
    %175 = vector.broadcast %cst_69 : f32 to vector<10x128xf32>
    %176 = arith.addf %175, %174 : vector<10x128xf32>
    %177 = arith.mulf %166, %176 : vector<10x128xf32>
    %178 = arith.truncf %177 : vector<10x128xf32> to vector<10x128xbf16>
    %c0_70 = arith.constant 0 : index
    %c0_71 = arith.constant 0 : index
    %c0_72 = arith.constant 0 : index
    %179 = vector.load %arg14[%c0_70, %c0_71, %c0_72] : memref<2x128x32xbf16, #tpu.memory_space<vmem>>, vector<1x128x32xbf16>
    %180 = vector.shape_cast %179 : vector<1x128x32xbf16> to vector<128x32xbf16>
    %cst_73 = arith.constant dense<0.000000e+00> : vector<10x32xf32>
    %181 = tpu.matmul %178, %180, %cst_73 {dimension_numbers = #tpu.dot_dimension_numbers<[1], [0], [0], [1], [0, 0, 1, 1], [], []>} : vector<10x128xbf16>, vector<128x32xbf16>, vector<10x32xf32> -> vector<10x32xf32>
    %c0_74 = arith.constant 0 : index
    %c0_75 = arith.constant 0 : index
    %c0_76 = arith.constant 0 : index
    %182 = vector.load %arg15[%c0_74, %c0_75, %c0_76] : memref<2x1x32xf32, #tpu.memory_space<vmem>>, vector<1x1x32xf32>
    %183 = vector.shape_cast %182 : vector<1x1x32xf32> to vector<1x32xf32>
    %184 = vector.broadcast %183 : vector<1x32xf32> to vector<10x32xf32>
    %185 = arith.addf %181, %184 : vector<10x32xf32>
    %186 = arith.addf %130, %185 : vector<10x32xf32>
    %c1 = arith.constant 1 : index
    %c0_77 = arith.constant 0 : index
    %c0_78 = arith.constant 0 : index
    %187 = vector.load %arg4[%c1, %c0_77, %c0_78] : memref<2x1x32xf32, #tpu.memory_space<vmem>>, vector<1x1x32xf32>
    %188 = vector.shape_cast %187 : vector<1x1x32xf32> to vector<1x32xf32>
    %c1_79 = arith.constant 1 : index
    %c0_80 = arith.constant 0 : index
    %c0_81 = arith.constant 0 : index
    %189 = vector.load %arg5[%c1_79, %c0_80, %c0_81] : memref<2x1x32xf32, #tpu.memory_space<vmem>>, vector<1x1x32xf32>
    %190 = vector.shape_cast %189 : vector<1x1x32xf32> to vector<1x32xf32>
    %cst_82 = arith.constant dense<0.000000e+00> : vector<10xf32>
    %191 = vector.multi_reduction <add>, %186, %cst_82 [1] : vector<10x32xf32> to vector<10xf32>
    %192 = vector.shape_cast %191 : vector<10xf32> to vector<10x1xf32>
    %cst_83 = arith.constant 3.200000e+01 : f32
    %193 = vector.broadcast %cst_83 : f32 to vector<10x1xf32>
    %194 = arith.divf %192, %193 : vector<10x1xf32>
    %195 = vector.broadcast %194 : vector<10x1xf32> to vector<10x32xf32>
    %196 = arith.subf %186, %195 : vector<10x32xf32>
    %197 = arith.mulf %196, %196 : vector<10x32xf32>
    %cst_84 = arith.constant dense<0.000000e+00> : vector<10xf32>
    %198 = vector.multi_reduction <add>, %197, %cst_84 [1] : vector<10x32xf32> to vector<10xf32>
    %199 = vector.shape_cast %198 : vector<10xf32> to vector<10x1xf32>
    %cst_85 = arith.constant 3.200000e+01 : f32
    %200 = vector.broadcast %cst_85 : f32 to vector<10x1xf32>
    %201 = arith.divf %199, %200 : vector<10x1xf32>
    %202 = vector.broadcast %194 : vector<10x1xf32> to vector<10x32xf32>
    %203 = arith.subf %186, %202 : vector<10x32xf32>
    %cst_86 = arith.constant 9.99999996E-13 : f32
    %204 = vector.broadcast %cst_86 : f32 to vector<10x1xf32>
    %205 = arith.addf %201, %204 : vector<10x1xf32>
    %206 = math.rsqrt %205 : vector<10x1xf32>
    %207 = vector.broadcast %206 : vector<10x1xf32> to vector<10x32xf32>
    %208 = arith.mulf %203, %207 : vector<10x32xf32>
    %209 = vector.broadcast %188 : vector<1x32xf32> to vector<10x32xf32>
    %210 = arith.mulf %208, %209 : vector<10x32xf32>
    %211 = vector.broadcast %190 : vector<1x32xf32> to vector<10x32xf32>
    %212 = arith.addf %210, %211 : vector<10x32xf32>
    %213 = arith.truncf %212 : vector<10x32xf32> to vector<10x32xbf16>
    %c1_87 = arith.constant 1 : index
    %c0_88 = arith.constant 0 : index
    %c0_89 = arith.constant 0 : index
    %214 = vector.load %arg6[%c1_87, %c0_88, %c0_89] : memref<2x32x96xbf16, #tpu.memory_space<vmem>>, vector<1x32x96xbf16>
    %215 = vector.shape_cast %214 : vector<1x32x96xbf16> to vector<32x96xbf16>
    %cst_90 = arith.constant dense<0.000000e+00> : vector<10x96xf32>
    %216 = tpu.matmul %213, %215, %cst_90 {dimension_numbers = #tpu.dot_dimension_numbers<[1], [0], [0], [1], [0, 0, 1, 1], [], []>} : vector<10x32xbf16>, vector<32x96xbf16>, vector<10x96xf32> -> vector<10x96xf32>
    %c1_91 = arith.constant 1 : index
    %c0_92 = arith.constant 0 : index
    %c0_93 = arith.constant 0 : index
    %217 = vector.load %arg7[%c1_91, %c0_92, %c0_93] : memref<2x1x96xf32, #tpu.memory_space<vmem>>, vector<1x1x96xf32>
    %218 = vector.shape_cast %217 : vector<1x1x96xf32> to vector<1x96xf32>
    %219 = vector.broadcast %218 : vector<1x96xf32> to vector<10x96xf32>
    %220 = arith.addf %216, %219 : vector<10x96xf32>
    %221 = vector.extract_strided_slice %220 {offsets = [0, 0], sizes = [10, 8], strides = [1, 1]} : vector<10x96xf32> to vector<10x8xf32>
    %222 = arith.truncf %221 : vector<10x8xf32> to vector<10x8xbf16>
    %223 = vector.extract_strided_slice %220 {offsets = [0, 32], sizes = [10, 8], strides = [1, 1]} : vector<10x96xf32> to vector<10x8xf32>
    %224 = arith.truncf %223 : vector<10x8xf32> to vector<10x8xbf16>
    %225 = vector.extract_strided_slice %220 {offsets = [0, 64], sizes = [10, 8], strides = [1, 1]} : vector<10x96xf32> to vector<10x8xf32>
    %226 = arith.truncf %225 : vector<10x8xf32> to vector<10x8xbf16>
    "tpu.trace_start"() <{level = 10 : i32, message = "qd,kd->qk"}> : () -> ()
    %cst_94 = arith.constant dense<0.000000e+00> : vector<10x10xf32>
    %227 = tpu.matmul %222, %224, %cst_94 {dimension_numbers = #tpu.dot_dimension_numbers<[1], [1], [0], [0], [0, 0, 1, 0], [], []>} : vector<10x8xbf16>, vector<10x8xbf16>, vector<10x10xf32> -> vector<10x10xf32>
    "tpu.trace_stop"() : () -> ()
    %228 = arith.addf %227, %6 : vector<10x10xf32>
    %cst_95 = arith.constant dense<0xFF800000> : vector<10xf32>
    %229 = vector.multi_reduction <maximumf>, %228, %cst_95 [1] : vector<10x10xf32> to vector<10xf32>
    %230 = vector.shape_cast %229 : vector<10xf32> to vector<10x1xf32>
    %231 = vector.broadcast %230 : vector<10x1xf32> to vector<10x10xf32>
    %232 = arith.subf %228, %231 : vector<10x10xf32>
    %233 = math.exp %232 : vector<10x10xf32>
    %cst_96 = arith.constant dense<0.000000e+00> : vector<10xf32>
    %234 = vector.multi_reduction <add>, %233, %cst_96 [1] : vector<10x10xf32> to vector<10xf32>
    %235 = vector.shape_cast %234 : vector<10xf32> to vector<10x1xf32>
    %236 = tpu.reciprocal %235 {approx = true} : vector<10x1xf32> -> vector<10x1xf32>
    %237 = vector.broadcast %236 : vector<10x1xf32> to vector<10x10xf32>
    %238 = arith.mulf %233, %237 : vector<10x10xf32>
    %239 = arith.truncf %238 : vector<10x10xf32> to vector<10x10xbf16>
    %cst_97 = arith.constant dense<0.000000e+00> : vector<10x8xf32>
    %240 = tpu.matmul %239, %226, %cst_97 {dimension_numbers = #tpu.dot_dimension_numbers<[1], [0], [0], [1], [0, 0, 1, 1], [], []>} : vector<10x10xbf16>, vector<10x8xbf16>, vector<10x8xf32> -> vector<10x8xf32>
    %241 = vector.extract_strided_slice %220 {offsets = [0, 8], sizes = [10, 8], strides = [1, 1]} : vector<10x96xf32> to vector<10x8xf32>
    %242 = arith.truncf %241 : vector<10x8xf32> to vector<10x8xbf16>
    %243 = vector.extract_strided_slice %220 {offsets = [0, 40], sizes = [10, 8], strides = [1, 1]} : vector<10x96xf32> to vector<10x8xf32>
    %244 = arith.truncf %243 : vector<10x8xf32> to vector<10x8xbf16>
    %245 = vector.extract_strided_slice %220 {offsets = [0, 72], sizes = [10, 8], strides = [1, 1]} : vector<10x96xf32> to vector<10x8xf32>
    %246 = arith.truncf %245 : vector<10x8xf32> to vector<10x8xbf16>
    "tpu.trace_start"() <{level = 10 : i32, message = "qd,kd->qk"}> : () -> ()
    %cst_98 = arith.constant dense<0.000000e+00> : vector<10x10xf32>
    %247 = tpu.matmul %242, %244, %cst_98 {dimension_numbers = #tpu.dot_dimension_numbers<[1], [1], [0], [0], [0, 0, 1, 0], [], []>} : vector<10x8xbf16>, vector<10x8xbf16>, vector<10x10xf32> -> vector<10x10xf32>
    "tpu.trace_stop"() : () -> ()
    %248 = arith.addf %247, %6 : vector<10x10xf32>
    %cst_99 = arith.constant dense<0xFF800000> : vector<10xf32>
    %249 = vector.multi_reduction <maximumf>, %248, %cst_99 [1] : vector<10x10xf32> to vector<10xf32>
    %250 = vector.shape_cast %249 : vector<10xf32> to vector<10x1xf32>
    %251 = vector.broadcast %250 : vector<10x1xf32> to vector<10x10xf32>
    %252 = arith.subf %248, %251 : vector<10x10xf32>
    %253 = math.exp %252 : vector<10x10xf32>
    %cst_100 = arith.constant dense<0.000000e+00> : vector<10xf32>
    %254 = vector.multi_reduction <add>, %253, %cst_100 [1] : vector<10x10xf32> to vector<10xf32>
    %255 = vector.shape_cast %254 : vector<10xf32> to vector<10x1xf32>
    %256 = tpu.reciprocal %255 {approx = true} : vector<10x1xf32> -> vector<10x1xf32>
    %257 = vector.broadcast %256 : vector<10x1xf32> to vector<10x10xf32>
    %258 = arith.mulf %253, %257 : vector<10x10xf32>
    %259 = arith.truncf %258 : vector<10x10xf32> to vector<10x10xbf16>
    %cst_101 = arith.constant dense<0.000000e+00> : vector<10x8xf32>
    %260 = tpu.matmul %259, %246, %cst_101 {dimension_numbers = #tpu.dot_dimension_numbers<[1], [0], [0], [1], [0, 0, 1, 1], [], []>} : vector<10x10xbf16>, vector<10x8xbf16>, vector<10x8xf32> -> vector<10x8xf32>
    %261 = vector.extract_strided_slice %220 {offsets = [0, 16], sizes = [10, 8], strides = [1, 1]} : vector<10x96xf32> to vector<10x8xf32>
    %262 = arith.truncf %261 : vector<10x8xf32> to vector<10x8xbf16>
    %263 = vector.extract_strided_slice %220 {offsets = [0, 48], sizes = [10, 8], strides = [1, 1]} : vector<10x96xf32> to vector<10x8xf32>
    %264 = arith.truncf %263 : vector<10x8xf32> to vector<10x8xbf16>
    %265 = vector.extract_strided_slice %220 {offsets = [0, 80], sizes = [10, 8], strides = [1, 1]} : vector<10x96xf32> to vector<10x8xf32>
    %266 = arith.truncf %265 : vector<10x8xf32> to vector<10x8xbf16>
    "tpu.trace_start"() <{level = 10 : i32, message = "qd,kd->qk"}> : () -> ()
    %cst_102 = arith.constant dense<0.000000e+00> : vector<10x10xf32>
    %267 = tpu.matmul %262, %264, %cst_102 {dimension_numbers = #tpu.dot_dimension_numbers<[1], [1], [0], [0], [0, 0, 1, 0], [], []>} : vector<10x8xbf16>, vector<10x8xbf16>, vector<10x10xf32> -> vector<10x10xf32>
    "tpu.trace_stop"() : () -> ()
    %268 = arith.addf %267, %6 : vector<10x10xf32>
    %cst_103 = arith.constant dense<0xFF800000> : vector<10xf32>
    %269 = vector.multi_reduction <maximumf>, %268, %cst_103 [1] : vector<10x10xf32> to vector<10xf32>
    %270 = vector.shape_cast %269 : vector<10xf32> to vector<10x1xf32>
    %271 = vector.broadcast %270 : vector<10x1xf32> to vector<10x10xf32>
    %272 = arith.subf %268, %271 : vector<10x10xf32>
    %273 = math.exp %272 : vector<10x10xf32>
    %cst_104 = arith.constant dense<0.000000e+00> : vector<10xf32>
    %274 = vector.multi_reduction <add>, %273, %cst_104 [1] : vector<10x10xf32> to vector<10xf32>
    %275 = vector.shape_cast %274 : vector<10xf32> to vector<10x1xf32>
    %276 = tpu.reciprocal %275 {approx = true} : vector<10x1xf32> -> vector<10x1xf32>
    %277 = vector.broadcast %276 : vector<10x1xf32> to vector<10x10xf32>
    %278 = arith.mulf %273, %277 : vector<10x10xf32>
    %279 = arith.truncf %278 : vector<10x10xf32> to vector<10x10xbf16>
    %cst_105 = arith.constant dense<0.000000e+00> : vector<10x8xf32>
    %280 = tpu.matmul %279, %266, %cst_105 {dimension_numbers = #tpu.dot_dimension_numbers<[1], [0], [0], [1], [0, 0, 1, 1], [], []>} : vector<10x10xbf16>, vector<10x8xbf16>, vector<10x8xf32> -> vector<10x8xf32>
    %281 = vector.extract_strided_slice %220 {offsets = [0, 24], sizes = [10, 8], strides = [1, 1]} : vector<10x96xf32> to vector<10x8xf32>
    %282 = arith.truncf %281 : vector<10x8xf32> to vector<10x8xbf16>
    %283 = vector.extract_strided_slice %220 {offsets = [0, 56], sizes = [10, 8], strides = [1, 1]} : vector<10x96xf32> to vector<10x8xf32>
    %284 = arith.truncf %283 : vector<10x8xf32> to vector<10x8xbf16>
    %285 = vector.extract_strided_slice %220 {offsets = [0, 88], sizes = [10, 8], strides = [1, 1]} : vector<10x96xf32> to vector<10x8xf32>
    %286 = arith.truncf %285 : vector<10x8xf32> to vector<10x8xbf16>
    "tpu.trace_start"() <{level = 10 : i32, message = "qd,kd->qk"}> : () -> ()
    %cst_106 = arith.constant dense<0.000000e+00> : vector<10x10xf32>
    %287 = tpu.matmul %282, %284, %cst_106 {dimension_numbers = #tpu.dot_dimension_numbers<[1], [1], [0], [0], [0, 0, 1, 0], [], []>} : vector<10x8xbf16>, vector<10x8xbf16>, vector<10x10xf32> -> vector<10x10xf32>
    "tpu.trace_stop"() : () -> ()
    %288 = arith.addf %287, %6 : vector<10x10xf32>
    %cst_107 = arith.constant dense<0xFF800000> : vector<10xf32>
    %289 = vector.multi_reduction <maximumf>, %288, %cst_107 [1] : vector<10x10xf32> to vector<10xf32>
    %290 = vector.shape_cast %289 : vector<10xf32> to vector<10x1xf32>
    %291 = vector.broadcast %290 : vector<10x1xf32> to vector<10x10xf32>
    %292 = arith.subf %288, %291 : vector<10x10xf32>
    %293 = math.exp %292 : vector<10x10xf32>
    %cst_108 = arith.constant dense<0.000000e+00> : vector<10xf32>
    %294 = vector.multi_reduction <add>, %293, %cst_108 [1] : vector<10x10xf32> to vector<10xf32>
    %295 = vector.shape_cast %294 : vector<10xf32> to vector<10x1xf32>
    %296 = tpu.reciprocal %295 {approx = true} : vector<10x1xf32> -> vector<10x1xf32>
    %297 = vector.broadcast %296 : vector<10x1xf32> to vector<10x10xf32>
    %298 = arith.mulf %293, %297 : vector<10x10xf32>
    %299 = arith.truncf %298 : vector<10x10xf32> to vector<10x10xbf16>
    %cst_109 = arith.constant dense<0.000000e+00> : vector<10x8xf32>
    %300 = tpu.matmul %299, %286, %cst_109 {dimension_numbers = #tpu.dot_dimension_numbers<[1], [0], [0], [1], [0, 0, 1, 1], [], []>} : vector<10x10xbf16>, vector<10x8xbf16>, vector<10x8xf32> -> vector<10x8xf32>
    %301 = tpu.concatenate %240, %260, %280, %300 in 1 : vector<10x8xf32>, vector<10x8xf32>, vector<10x8xf32>, vector<10x8xf32> -> vector<10x32xf32>
    %302 = arith.truncf %301 : vector<10x32xf32> to vector<10x32xbf16>
    %c1_110 = arith.constant 1 : index
    %c0_111 = arith.constant 0 : index
    %c0_112 = arith.constant 0 : index
    %303 = vector.load %arg8[%c1_110, %c0_111, %c0_112] : memref<2x32x32xbf16, #tpu.memory_space<vmem>>, vector<1x32x32xbf16>
    %304 = vector.shape_cast %303 : vector<1x32x32xbf16> to vector<32x32xbf16>
    %cst_113 = arith.constant dense<0.000000e+00> : vector<10x32xf32>
    %305 = tpu.matmul %302, %304, %cst_113 {dimension_numbers = #tpu.dot_dimension_numbers<[1], [0], [0], [1], [0, 0, 1, 1], [], []>} : vector<10x32xbf16>, vector<32x32xbf16>, vector<10x32xf32> -> vector<10x32xf32>
    %c1_114 = arith.constant 1 : index
    %c0_115 = arith.constant 0 : index
    %c0_116 = arith.constant 0 : index
    %306 = vector.load %arg9[%c1_114, %c0_115, %c0_116] : memref<2x1x32xf32, #tpu.memory_space<vmem>>, vector<1x1x32xf32>
    %307 = vector.shape_cast %306 : vector<1x1x32xf32> to vector<1x32xf32>
    %308 = vector.broadcast %307 : vector<1x32xf32> to vector<10x32xf32>
    %309 = arith.addf %305, %308 : vector<10x32xf32>
    %310 = arith.addf %186, %309 : vector<10x32xf32>
    %c1_117 = arith.constant 1 : index
    %c0_118 = arith.constant 0 : index
    %c0_119 = arith.constant 0 : index
    %311 = vector.load %arg10[%c1_117, %c0_118, %c0_119] : memref<2x1x32xf32, #tpu.memory_space<vmem>>, vector<1x1x32xf32>
    %312 = vector.shape_cast %311 : vector<1x1x32xf32> to vector<1x32xf32>
    %c1_120 = arith.constant 1 : index
    %c0_121 = arith.constant 0 : index
    %c0_122 = arith.constant 0 : index
    %313 = vector.load %arg11[%c1_120, %c0_121, %c0_122] : memref<2x1x32xf32, #tpu.memory_space<vmem>>, vector<1x1x32xf32>
    %314 = vector.shape_cast %313 : vector<1x1x32xf32> to vector<1x32xf32>
    %cst_123 = arith.constant dense<0.000000e+00> : vector<10xf32>
    %315 = vector.multi_reduction <add>, %310, %cst_123 [1] : vector<10x32xf32> to vector<10xf32>
    %316 = vector.shape_cast %315 : vector<10xf32> to vector<10x1xf32>
    %cst_124 = arith.constant 3.200000e+01 : f32
    %317 = vector.broadcast %cst_124 : f32 to vector<10x1xf32>
    %318 = arith.divf %316, %317 : vector<10x1xf32>
    %319 = vector.broadcast %318 : vector<10x1xf32> to vector<10x32xf32>
    %320 = arith.subf %310, %319 : vector<10x32xf32>
    %321 = arith.mulf %320, %320 : vector<10x32xf32>
    %cst_125 = arith.constant dense<0.000000e+00> : vector<10xf32>
    %322 = vector.multi_reduction <add>, %321, %cst_125 [1] : vector<10x32xf32> to vector<10xf32>
    %323 = vector.shape_cast %322 : vector<10xf32> to vector<10x1xf32>
    %cst_126 = arith.constant 3.200000e+01 : f32
    %324 = vector.broadcast %cst_126 : f32 to vector<10x1xf32>
    %325 = arith.divf %323, %324 : vector<10x1xf32>
    %326 = vector.broadcast %318 : vector<10x1xf32> to vector<10x32xf32>
    %327 = arith.subf %310, %326 : vector<10x32xf32>
    %cst_127 = arith.constant 9.99999996E-13 : f32
    %328 = vector.broadcast %cst_127 : f32 to vector<10x1xf32>
    %329 = arith.addf %325, %328 : vector<10x1xf32>
    %330 = math.rsqrt %329 : vector<10x1xf32>
    %331 = vector.broadcast %330 : vector<10x1xf32> to vector<10x32xf32>
    %332 = arith.mulf %327, %331 : vector<10x32xf32>
    %333 = vector.broadcast %312 : vector<1x32xf32> to vector<10x32xf32>
    %334 = arith.mulf %332, %333 : vector<10x32xf32>
    %335 = vector.broadcast %314 : vector<1x32xf32> to vector<10x32xf32>
    %336 = arith.addf %334, %335 : vector<10x32xf32>
    %337 = arith.truncf %336 : vector<10x32xf32> to vector<10x32xbf16>
    %c1_128 = arith.constant 1 : index
    %c0_129 = arith.constant 0 : index
    %c0_130 = arith.constant 0 : index
    %338 = vector.load %arg12[%c1_128, %c0_129, %c0_130] : memref<2x32x128xbf16, #tpu.memory_space<vmem>>, vector<1x32x128xbf16>
    %339 = vector.shape_cast %338 : vector<1x32x128xbf16> to vector<32x128xbf16>
    %cst_131 = arith.constant dense<0.000000e+00> : vector<10x128xf32>
    %340 = tpu.matmul %337, %339, %cst_131 {dimension_numbers = #tpu.dot_dimension_numbers<[1], [0], [0], [1], [0, 0, 1, 1], [], []>} : vector<10x32xbf16>, vector<32x128xbf16>, vector<10x128xf32> -> vector<10x128xf32>
    %c1_132 = arith.constant 1 : index
    %c0_133 = arith.constant 0 : index
    %c0_134 = arith.constant 0 : index
    %341 = vector.load %arg13[%c1_132, %c0_133, %c0_134] : memref<2x1x128xf32, #tpu.memory_space<vmem>>, vector<1x1x128xf32>
    %342 = vector.shape_cast %341 : vector<1x1x128xf32> to vector<1x128xf32>
    %343 = vector.broadcast %342 : vector<1x128xf32> to vector<10x128xf32>
    %344 = arith.addf %340, %343 : vector<10x128xf32>
    %cst_135 = arith.constant 5.000000e-01 : f32
    %345 = vector.broadcast %cst_135 : f32 to vector<10x128xf32>
    %346 = arith.mulf %345, %344 : vector<10x128xf32>
    %cst_136 = arith.constant 4.471500e-02 : f32
    %347 = vector.broadcast %cst_136 : f32 to vector<10x128xf32>
    %348 = arith.mulf %347, %344 : vector<10x128xf32>
    %349 = arith.mulf %348, %344 : vector<10x128xf32>
    %350 = arith.mulf %349, %344 : vector<10x128xf32>
    %351 = arith.addf %344, %350 : vector<10x128xf32>
    %cst_137 = arith.constant 0.797884583 : f32
    %352 = vector.broadcast %cst_137 : f32 to vector<10x128xf32>
    %353 = arith.mulf %352, %351 : vector<10x128xf32>
    %354 = math.tanh %353 : vector<10x128xf32>
    %cst_138 = arith.constant 1.000000e+00 : f32
    %355 = vector.broadcast %cst_138 : f32 to vector<10x128xf32>
    %356 = arith.addf %355, %354 : vector<10x128xf32>
    %357 = arith.mulf %346, %356 : vector<10x128xf32>
    %358 = arith.truncf %357 : vector<10x128xf32> to vector<10x128xbf16>
    %c1_139 = arith.constant 1 : index
    %c0_140 = arith.constant 0 : index
    %c0_141 = arith.constant 0 : index
    %359 = vector.load %arg14[%c1_139, %c0_140, %c0_141] : memref<2x128x32xbf16, #tpu.memory_space<vmem>>, vector<1x128x32xbf16>
    %360 = vector.shape_cast %359 : vector<1x128x32xbf16> to vector<128x32xbf16>
    %cst_142 = arith.constant dense<0.000000e+00> : vector<10x32xf32>
    %361 = tpu.matmul %358, %360, %cst_142 {dimension_numbers = #tpu.dot_dimension_numbers<[1], [0], [0], [1], [0, 0, 1, 1], [], []>} : vector<10x128xbf16>, vector<128x32xbf16>, vector<10x32xf32> -> vector<10x32xf32>
    %c1_143 = arith.constant 1 : index
    %c0_144 = arith.constant 0 : index
    %c0_145 = arith.constant 0 : index
    %362 = vector.load %arg15[%c1_143, %c0_144, %c0_145] : memref<2x1x32xf32, #tpu.memory_space<vmem>>, vector<1x1x32xf32>
    %363 = vector.shape_cast %362 : vector<1x1x32xf32> to vector<1x32xf32>
    %364 = vector.broadcast %363 : vector<1x32xf32> to vector<10x32xf32>
    %365 = arith.addf %361, %364 : vector<10x32xf32>
    %366 = arith.addf %310, %365 : vector<10x32xf32>
    %367 = vector.extract_strided_slice %366 {offsets = [0, 0], sizes = [2, 32], strides = [1, 1]} : vector<10x32xf32> to vector<2x32xf32>
    %c0_146 = arith.constant 0 : index
    %c0_147 = arith.constant 0 : index
    %368 = vector.load %arg16[%c0_146, %c0_147] : memref<1x32xf32, #tpu.memory_space<vmem>>, vector<1x32xf32>
    %c0_148 = arith.constant 0 : index
    %c0_149 = arith.constant 0 : index
    %369 = vector.load %arg17[%c0_148, %c0_149] : memref<1x32xf32, #tpu.memory_space<vmem>>, vector<1x32xf32>
    %cst_150 = arith.constant dense<0.000000e+00> : vector<2xf32>
    %370 = vector.multi_reduction <add>, %367, %cst_150 [1] : vector<2x32xf32> to vector<2xf32>
    %371 = vector.shape_cast %370 : vector<2xf32> to vector<2x1xf32>
    %cst_151 = arith.constant 3.200000e+01 : f32
    %372 = vector.broadcast %cst_151 : f32 to vector<2x1xf32>
    %373 = arith.divf %371, %372 : vector<2x1xf32>
    %374 = vector.broadcast %373 : vector<2x1xf32> to vector<2x32xf32>
    %375 = arith.subf %367, %374 : vector<2x32xf32>
    %376 = arith.mulf %375, %375 : vector<2x32xf32>
    %cst_152 = arith.constant dense<0.000000e+00> : vector<2xf32>
    %377 = vector.multi_reduction <add>, %376, %cst_152 [1] : vector<2x32xf32> to vector<2xf32>
    %378 = vector.shape_cast %377 : vector<2xf32> to vector<2x1xf32>
    %cst_153 = arith.constant 3.200000e+01 : f32
    %379 = vector.broadcast %cst_153 : f32 to vector<2x1xf32>
    %380 = arith.divf %378, %379 : vector<2x1xf32>
    %381 = vector.broadcast %373 : vector<2x1xf32> to vector<2x32xf32>
    %382 = arith.subf %367, %381 : vector<2x32xf32>
    %cst_154 = arith.constant 9.99999996E-13 : f32
    %383 = vector.broadcast %cst_154 : f32 to vector<2x1xf32>
    %384 = arith.addf %380, %383 : vector<2x1xf32>
    %385 = math.rsqrt %384 : vector<2x1xf32>
    %386 = vector.broadcast %385 : vector<2x1xf32> to vector<2x32xf32>
    %387 = arith.mulf %382, %386 : vector<2x32xf32>
    %388 = vector.broadcast %368 : vector<1x32xf32> to vector<2x32xf32>
    %389 = arith.mulf %387, %388 : vector<2x32xf32>
    %390 = vector.broadcast %369 : vector<1x32xf32> to vector<2x32xf32>
    %391 = arith.addf %389, %390 : vector<2x32xf32>
    %392 = arith.truncf %391 : vector<2x32xf32> to vector<2x32xbf16>
    %c0_155 = arith.constant 0 : index
    %c0_156 = arith.constant 0 : index
    %393 = vector.load %arg18[%c0_155, %c0_156] : memref<32x2xbf16, #tpu.memory_space<vmem>>, vector<32x2xbf16>
    %cst_157 = arith.constant dense<0.000000e+00> : vector<2x2xf32>
    %394 = tpu.matmul %392, %393, %cst_157 {dimension_numbers = #tpu.dot_dimension_numbers<[1], [0], [0], [1], [0, 0, 1, 1], [], []>} : vector<2x32xbf16>, vector<32x2xbf16>, vector<2x2xf32> -> vector<2x2xf32>
    %c0_158 = arith.constant 0 : index
    %c0_159 = arith.constant 0 : index
    %395 = vector.load %arg19[%c0_158, %c0_159] : memref<1x2xf32, #tpu.memory_space<vmem>>, vector<1x2xf32>
    %396 = vector.broadcast %395 : vector<1x2xf32> to vector<2x2xf32>
    %397 = arith.addf %394, %396 : vector<2x2xf32>
    %c0_160 = arith.constant 0 : index
    %c0_161 = arith.constant 0 : index
    %398 = vector.load %arg20[%c0_160, %c0_161] : memref<2x2xf32, #tpu.memory_space<vmem>>, vector<2x2xf32>
    tpu.vector_store %arg20[%c0_160, %c0_161], %397 {strides = array<i32>} : memref<2x2xf32, #tpu.memory_space<vmem>>, vector<2x2xf32>,
    return
  }
}

</mosaic_0001>

<bundles_post_ra>
// kernel: vit_forward.1
= control target key start
LH: loop header
LB: loop body
LE: loop exit
PB: predicated region body
PF: predicated region fallthrough
CT: control target
= control target key end

     0   :  { %s3501_s0 = inlined_call_operand.vmem [shape: f32[10,192], index: 0, kind: input, shape index: {}]   ;;  %s3502_s1 = inlined_call_operand.vmem [shape: f32[10,32], index: 1, kind: input, shape index: {}]   ;;  %s3503_s2 = inlined_call_operand.vmem [shape: f32[10,10], index: 2, kind: input, shape index: {}]   ;;  %s3504_s3 = inlined_call_operand.vmem [shape: bf16[192,32], index: 3, kind: input, shape index: {}]   ;;  %s3505_s4 = inlined_call_operand.vmem [shape: f32[2,1,32], index: 4, kind: input, shape index: {}]   ;;  %s3506_s5 = inlined_call_operand.vmem [shape: f32[2,1,32], index: 5, kind: input, shape index: {}]   ;;  %s3507_s6 = inlined_call_operand.vmem [shape: bf16[2,32,96], index: 6, kind: input, shape index: {}]   ;;  %s3508_s7 = inlined_call_operand.vmem [shape: f32[2,1,96], index: 7, kind: input, shape index: {}]   ;;  %s3509_s8 = inlined_call_operand.vmem [shape: bf16[2,32,32], index: 8, kind: input, shape index: {}]   ;;  %s3510_s9 = inlined_call_operand.vmem [shape: f32[2,1,32], index: 9, kind: input, shape index: {}]   ;;  %s3511_s10 = inlined_call_operand.vmem [shape: f32[2,1,32], index: 10, kind: input, shape index: {}]   ;;  %s3512_s11 = inlined_call_operand.vmem [shape: f32[2,1,32], index: 11, kind: input, shape index: {}]   ;;  %s3513_s12 = inlined_call_operand.vmem [shape: bf16[2,32,128], index: 12, kind: input, shape index: {}]   ;;  %s3514_s13 = inlined_call_operand.vmem [shape: f32[2,1,128], index: 13, kind: input, shape index: {}]   ;;  %s3515_s14 = inlined_call_operand.vmem [shape: bf16[2,128,32], index: 14, kind: input, shape index: {}]   ;;  %s3516_s15 = inlined_call_operand.vmem [shape: f32[2,1,32], index: 15, kind: input, shape index: {}]   ;;  %s3517_s16 = inlined_call_operand.vmem [shape: f32[1,32], index: 16, kind: input, shape index: {}]   ;;  %s3518_s17 = inlined_call_operand.vmem [shape: f32[1,32], index: 17, kind: input, shape index: {}]   ;;  %s3519_s18 = inlined_call_operand.vmem [shape: bf16[32,2], index: 18, kind: input, shape index: {}]   ;;  %s3520_s19 = inlined_call_operand.vmem [shape: f32[1,2], index: 19, kind: input, shape index: {}]   ;;  %s3521_s20 = inlined_call_operand.hbm [shape: f32[2,2], index: 20, kind: output, shape index: {}]  }
   0x1   :  { %3536 = sst [smem:[#allocation5_spill]] %s3501_s0 }
   0x2   :  { %3537 = sst [smem:[#allocation6_spill]] %s3502_s1 }
   0x3   :  { %3538 = sst [smem:[#allocation7_spill]] %s3503_s2 }
   0x4   :  { %3539 = sst [smem:[#allocation8_spill]] %s3504_s3 }
   0x5   :  { %3540 = sst [smem:[#allocation9_spill]] %s3505_s4 }
   0x6   :  { %s3541_s23 = sld [smem:[#allocation8_spill]]  ;;  %v2835_v1 = vmov 0   ;;  %vm171_vm0 = vcmask 523264  }
   0x7   :  { %175 = vmatprep.subr.bf16.mxu0 %v2835_v1  ;;  %s3542_s29 = sld [smem:[#allocation5_spill]] }
   0xc   :  { %v2679_v0 = vld [vmem:[%s3541_s23 + $0x38] sm:$0xff]   ;;  %v2680_v2 = vld [vmem:[%s3541_s23 + $0x30] sm:$0xff]   ;;  %v2681_v3 = vld [vmem:[%s3541_s23 + $0x28] sm:$0xff]  }
   0xd   :  { %176 = vmatpush1.bf16.msra.mxu0 %v2679_v0  ;;  %v2682_v4 = vld [vmem:[%s3541_s23 + $0x20] sm:$0xff]   ;;  %v68_v5 = vld [vmem:[%s3542_s29 + $0x8] sm:$0xff]  ;;  %v70_v6 = vld [vmem:[%s3542_s29 + $0x18] sm:$0x3] }
   0xe   :  { %177 = vmatprep.subr.bf16.mxu0 %v2835_v1  ;;  %v2683_v7 = vld [vmem:[%s3541_s23 + $0x18] sm:$0xff]   ;;  %v72_v8 = vpack.c.bf16 %v70_v6, %v68_v5  ;;  %v2684_v9 = vld [vmem:[%s3541_s23 + $0x10] sm:$0xff]   ;;  %v2685_v10 = vld [vmem:[%s3541_s23 + $0x8] sm:$0xff]  }
   0xf   :  { %v2686_v11 = vld [vmem:[%s3541_s23] sm:$0xff]   ;;  %v2687_v12 = vld [vmem:[%s3541_s23 + $0x58] sm:$0xff]  }
  0x10   :  { %2259 = vmatprep.mubr.msk.bf16.mxu0 %vm171_vm0, %v72_v8 }
  0x11   :  { %178 = vmatpush1.bf16.msra.mxu0 %v2680_v2 }
  0x12   :  { %179 = vmatprep.subr.bf16.mxu0 %v2835_v1 }
  0x15   :  { %180 = vmatpush1.bf16.msra.mxu0 %v2681_v3 }
  0x16   :  { %181 = vmatprep.subr.bf16.mxu0 %v2835_v1 }
  0x19   :  { %182 = vmatpush1.bf16.msra.mxu0 %v2682_v4 }
  0x1a   :  { %183 = vmatprep.subr.bf16.mxu0 %v2835_v1 }
  0x1d   :  { %184 = vmatpush1.bf16.msra.mxu0 %v2683_v7 }
  0x1e   :  { %185 = vmatprep.subr.bf16.mxu0 %v2835_v1 }
  0x21   :  { %186 = vmatpush1.bf16.msra.mxu0 %v2684_v9 }
  0x22   :  { %187 = vmatprep.subr.bf16.mxu0 %v2835_v1 }
  0x25   :  { %188 = vmatpush1.bf16.msra.mxu0 %v2685_v10 }
  0x26   :  { %189 = vmatprep.subr.bf16.mxu0 %v2835_v1 }
  0x29   :  { %190 = vmatpush1.bf16.msra.mxu0 %v2686_v11 }
  0x2a   :  { %199 = vmatprep.subr.bf16.mxu0 %v2835_v1 }
  0x2b   :  { %25 = vsyncpa [#allocation3], 0  ;;  %v2688_v13 = vld [vmem:[%s3541_s23 + $0x50] sm:$0xff]   ;;  %v2689_v14 = vld [vmem:[%s3541_s23 + $0x48] sm:$0xff]   ;;  %s3543_s28 = sld [smem:[#allocation6_spill]]  ;;  %vm220_vm1 = vcmask 261120  }
  0x2c   :  { %v2690_v15 = vld [vmem:[%s3541_s23 + $0x40] sm:$0xff]   ;;  %v69_v17 = vld [vmem:[%s3542_s29 + $0x10] sm:$0x3]  ;;  %vm224_vm2 = vcmask 254976   ;;  %v2691_v39 = vld [vmem:[%s3507_s6 + $0x8] sm:$0xff]   ;;  %v2836_v40 = vmov 0.0  }
  0x2d   :  { %200 = vmatpush2.bf16.msra.mxu0 %v2687_v12  ;;  %v67_v16 = vld [vmem:[%s3542_s29] sm:$0xff]  ;;  %2439 = vmatprep.subr.bf16.mxu1 %v2836_v40  ;;  %vm2837_vm3 = vmmov 0   ;;  %s3544_s24 = sld [smem:[#allocation9_spill]]  ;;  %s2838_s27 = smov 96   ;;  %vm337_vm4 = vcmask 64512   ;;  %vm385_vm5 = vcmask 80896  }
  0x2e   :  { %201 = vmatprep.subr.bf16.mxu0 %v2835_v1  ;;  %v71_v18 = vpack.c.bf16 %v69_v17, %v67_v16  ;;  %2443 = vmatprep.mubr.msk.bf16.mxu1 %vm2837_vm3, %v2836_v40  ;;  %v2692_v41 = vld [vmem:[%s3507_s6] sm:$0xff]   ;;  %s2840_s23 = smov 120   ;;  %s3545_s30 = sld [smem:[#allocation7_spill]]  ;;  %vm389_vm6 = vcmask 74752   ;;  %vm415_vm7 = vcmask 1044480   ;;  %vm855_vm8 = vcmask 130048  }
  0x2f   :  { %2440 = vmatpush3.bf16.msra.mxu1 %v2691_v39  ;;  %v2261_v54 = vld [vmem:[%s3506_s5] ss:$0 sm:$0xff]  ;;  %s3535_s1 = smov 64   ;;  %s2842_s22 = smov 80   ;;  %vm858_vm9 = vcmask 195584   ;;  %vm2231_vm10 = vcmask 9216  }
  0x30   :  { %2441 = vmatprep.subr.bf16.mxu1 %v2836_v40  ;;  %v2262_v60 = vld [vmem:[%s3508_s7] ss:$0 sm:$0xff]  ;;  %s3534_s2 = smov 112   ;;  %s3530_s25 = smov 56  }
  0x31   :  { %202 = vmatpush2.bf16.msra.mxu0 %v2688_v13  ;;  %v97_v19 = vld [vmem:[%s3543_s28] sm:$0xff]  ;;  %v98_v23 = vld [vmem:[%s3543_s28 + $0x8] sm:$0x3]  ;;  %s2839_s28 = smov 88   ;;  %s3531_s3 = smov 48  }
  0x32   :  { %203 = vmatprep.subr.bf16.mxu0 %v2835_v1  ;;  %s3533_s26 = smov 104   ;;  %s2847_s4 = smov 72  }
  0x33   :  { %2442 = vmatpush3.bf16.msra.mxu1 %v2692_v41  ;;  %v2260_v50 = vld [vmem:[%s3544_s24] ss:$0 sm:$0xff]  ;;  %s3528_s29 = smov 8   ;;  %s3529_s0 = smov 40  }
  0x34   :  { %2447 = vmatprep.subr.bf16.mxu1 %v2836_v40  ;;  %v3067_v5 = vld [vmem:[%s3545_s30] sm:$0xff]  ;;  %v3073_v9 = vld [vmem:[%s3545_s30 + $0x8] sm:$0x3]  ;;  %s3527_s21 = smov 16  }
  0x35   :  { %204 = vmatpush2.bf16.msra.mxu0 %v2689_v14 }
  0x36   :  { %205 = vmatprep.subr.bf16.mxu0 %v2835_v1 }
  0x39   :  { %206 = vmatpush2.bf16.msra.mxu0 %v2690_v15 }
  0x3a   :  { %2489 = vmatprep.subr.bf16.mxu0 %v2836_v40 }
  0x3c   :  { %208 = vmatmul.mubr.bf16.vlgmr.msra.gmra.mxu0 %v71_v18 }
  0x3d   :  { %2491 = vmatprep.mubr.msk.bf16.mxu0 %vm2837_vm3, %v2836_v40 }
  0xfc   :  { %v209_v20 = vpop.f32.mrf.mxu0 }
  0xfd   :  { %v3009_v21 = vadd.f32 %v209_v20, %v97_v19 }
  0xfe   :  { %v211_v22 = vpop.f32.mrf.mxu0 }
  0xff   :  { %v221_v24 = vsel %vm220_vm1, %v3009_v21, 0.0 }
 0x100   :  { %v212_v25 = vpop.f32.mrf.mxu0  ;;  %222 = vadd.xlane.f32.xlu0 %v221_v24 }
 0x101   :  { %v3016_v26 = vadd.f32 %v212_v25, %v98_v23 }
 0x102   :  { %v214_v27 = vpop.f32.mrf.mxu0 }
 0x103   :  { %v225_v28 = vsel %vm224_vm2, %v3016_v26, 0.0 }
 0x104   :  { %226 = vadd.xlane.f32.xlu0 %v225_v28 }
 0x189   :  { %v223_v29 = vpop.xlane.xlu0 %222 }
 0x18a   :  { %v229_v30 = vmul.f32 0.03125, %v223_v29 }
 0x18c   :  { %v231_v31 = vsub.f32 %v3009_v21, %v229_v30 }
 0x18d   :  { %v227_v32 = vpop.xlane.xlu0 %226 }
 0x18e   :  { %v230_v33 = vmul.f32 0.03125, %v227_v32  ;;  %v233_v34 = vmul.f32 %v231_v31, %v231_v31 }
 0x190   :  { %v232_v35 = vsub.f32 %v3016_v26, %v230_v33  ;;  %v235_v36 = vsel %vm220_vm1, %v233_v34, 0.0 }
 0x191   :  { %236 = vadd.xlane.f32.xlu1 %v235_v36 }
 0x192   :  { %v234_v37 = vmul.f32 %v232_v35, %v232_v35 }
 0x194   :  { %v238_v38 = vsel %vm224_vm2, %v234_v37, 0.0 }
 0x195   :  { %239 = vadd.xlane.f32.xlu1 %v238_v38 }
 0x21a   :  { %v237_v42 = vpop.xlane.xlu1 %236 }
 0x21b   :  { %v241_v43 = vmul.f32 0.03125, %v237_v42 }
 0x21d   :  { %v243_v44 = vadd.f32 1e-12, %v241_v43 }
 0x21e   :  { %v240_v45 = vpop.xlane.xlu1 %239 }
 0x21f   :  { %2721 = vrsqrt.f32 %v243_v44  ;;  %v242_v46 = vmul.f32 0.03125, %v240_v45 }
 0x221   :  { %v244_v47 = vadd.f32 1e-12, %v242_v46 }
 0x223   :  { %2723 = vrsqrt.f32 %v244_v47 }
 0x22c   :  { %v2722_v48 = vpop.eup %2721 }
 0x22d   :  { %v247_v49 = vmul.f32 %v2722_v48, %v231_v31 }
 0x22f   :  { %v255_v53 = vmul.f32 %v2260_v50, %v247_v49 }
 0x230   :  { %v2724_v51 = vpop.eup %2723 }
 0x231   :  { %v248_v52 = vmul.f32 %v2724_v51, %v232_v35  ;;  %v263_v56 = vadd.f32 %v2261_v54, %v255_v53 }
 0x233   :  { %v256_v55 = vmul.f32 %v2260_v50, %v248_v52 }
 0x235   :  { %v264_v57 = vadd.f32 %v2261_v54, %v256_v55 }
 0x237   :  { %v265_v58 = vpack.c.bf16 %v264_v57, %v263_v56 }
 0x239   :  { %2444 = vmatmul.mubr.msk.bf16.vlgmr.msra.gmra.mxu1 %vm220_vm1, %v265_v58 }
 0x23a   :  { %2449 = vmatprep.mubr.msk.bf16.mxu1 %vm2837_vm3, %v2836_v40 }
 0x2f9   :  { %v326_v59 = vpop.f32.mrf.mxu1 }
 0x2fa   :  { %v327_v63 = vadd.f32 %v2262_v60, %v326_v59 }
 0x2fb   :  { %v2445_v61 = vpop.f32.mrf.mxu1 }
 0x2fd   :  { %v329_v62 = vpop.f32.mrf.mxu1 }
 0x2fe   :  { %v330_v0 = vadd.f32 %v2262_v60, %v329_v62 }
 0x2ff   :  { %v2446_v1 = vpop.f32.mrf.mxu1 }
 0x300   :  { %v3050_v2 = vpack.c.bf16 %v330_v0, %v327_v63 }
 0x302   :  { %335 = vrot.lane.b32.xlu0 %v3050_v2, %s2838_s27 }
 0x306   :  { %462 = vrot.lane.b32.xlu0 %v3050_v2, %s2839_s28 }
 0x30a   :  { %460 = vrot.lane.b32.xlu0 %v3050_v2, %s2840_s23 }
 0x374   :  { %v336_v3 = vpop.permute.xlu0 %335 }
 0x375   :  { %v342_v4 = vsel %vm337_vm4, %v336_v3, 0 }
 0x376   :  { %2448 = vmatpush3.bf16.xpose.msra.mxu1 %v342_v4 }
 0x377   :  { %2453 = vmatprep.subr.bf16.mxu1 %v2836_v40 }
 0x378   :  { %v463_v35 = vpop.permute.xlu0 %462 }
 0x379   :  { %v468_v37 = vsel %vm337_vm4, %v463_v35, 0 }
 0x37c   :  { %v461_v38 = vpop.permute.xlu0 %460 }
 0x37d   :  { %2450 = vmatmul.mubr.msk.bf16.vlgmr.msra.gmra.mxu1 %vm337_vm4, %v3050_v2 }
 0x37e   :  { %2455 = vmatprep.mubr.msk.bf16.mxu1 %vm2837_vm3, %v2836_v40 }
 0x43d   :  { %v378_v6 = vpop.f32.mrf.mxu1 }
 0x43e   :  { %v379_v7 = vadd.f32 %v378_v6, %v3067_v5 }
 0x43f   :  { %v2451_v8 = vpop.f32.mrf.mxu1 }
 0x440   :  { %v386_v10 = vsel %vm385_vm5, %v379_v7, -inf }
 0x441   :  { %387 = vmax.xlane.f32.xlu1 %v386_v10  ;;  %v381_v11 = vpop.f32.mrf.mxu1 }
 0x442   :  { %v382_v12 = vadd.f32 %v381_v11, %v3073_v9 }
 0x443   :  { %v2452_v13 = vpop.f32.mrf.mxu1 }
 0x444   :  { %v390_v14 = vsel %vm389_vm6, %v382_v12, -inf }
 0x445   :  { %391 = vmax.xlane.f32.xlu1 %v390_v14 }
 0x4ca   :  { %v388_v15 = vpop.xlane.xlu1 %387 }
 0x4cb   :  { %v393_v16 = vsub.f32 %v379_v7, %v388_v15 }
 0x4cd   :  { %v395_v17 = vmul.f32 1.442695, %v393_v16 }
 0x4ce   :  { %v392_v18 = vpop.xlane.xlu1 %391 }
 0x4cf   :  { %2725 = vpow2.f32 %v395_v17  ;;  %v394_v19 = vsub.f32 %v382_v12, %v392_v18 }
 0x4d1   :  { %v397_v20 = vmul.f32 1.442695, %v394_v19 }
 0x4d3   :  { %2727 = vpow2.f32 %v397_v20 }
 0x4dc   :  { %v2726_v22 = vpop.eup %2725 }
 0x4dd   :  { %v399_v23 = vsel %vm385_vm5, %v2726_v22, 0.0 }
 0x4de   :  { %400 = vadd.xlane.f32.xlu1 %v399_v23 }
 0x4e0   :  { %v2728_v24 = vpop.eup %2727 }
 0x4e1   :  { %v402_v25 = vsel %vm389_vm6, %v2728_v24, 0.0 }
 0x4e2   :  { %403 = vadd.xlane.f32.xlu1 %v402_v25 }
 0x4f3   :  { %410 = vrot.lane.b32.xlu1 %v3050_v2, %s3535_s1 }
 0x567   :  { %v401_v27 = vpop.xlane.xlu1 %400 }
 0x568   :  { %2729 = vrcp.f32 %v401_v27 }
 0x56b   :  { %v404_v28 = vpop.xlane.xlu1 %403 }
 0x56c   :  { %2731 = vrcp.f32 %v404_v28 }
 0x56f   :  { %v411_v29 = vpop.permute.xlu1 %410 }
 0x570   :  { %v417_v30 = vsel %vm415_vm7, %v411_v29, 0 }
 0x571   :  { %2454 = vmatpush3.bf16.msra.mxu1 %v417_v30 }
 0x572   :  { %2459 = vmatprep.subr.bf16.mxu1 %v2836_v40 }
 0x575   :  { %v2730_v31 = vpop.eup %2729 }
 0x576   :  { %v407_v33 = vmul.f32 %v2730_v31, %v2726_v22 }
 0x579   :  { %v2732_v32 = vpop.eup %2731 }
 0x57a   :  { %v408_v34 = vmul.f32 %v2732_v32, %v2728_v24 }
 0x57c   :  { %v409_v36 = vpack.c.bf16 %v408_v34, %v407_v33 }
 0x57e   :  { %2456 = vmatmul.mubr.msk.bf16.vlgmr.msra.gmra.mxu1 %vm385_vm5, %v409_v36 }
 0x57f   :  { %2460 = vmatpush3.bf16.xpose.msra.mxu1 %v468_v37  ;;  %2461 = vmatprep.mubr.msk.bf16.mxu1 %vm2837_vm3, %v2836_v40 }
 0x580   :  { %2465 = vmatprep.subr.bf16.mxu1 %v2836_v40 }
 0x586   :  { %2462 = vmatmul.mubr.msk.bf16.vlgmr.msra.gmra.mxu1 %vm337_vm4, %v461_v38 }
 0x587   :  { %2467 = vmatprep.mubr.msk.bf16.mxu1 %vm2837_vm3, %v2836_v40 }
 0x63e   :  { %v3092_v39 = vpop.f32.mrf.mxu1 }
 0x640   :  { %v2457_v41 = vpop.f32.mrf.mxu1 }
 0x642   :  { %v3094_v42 = vpop.f32.mrf.mxu1 }
 0x644   :  { %v2458_v43 = vpop.f32.mrf.mxu1 }
 0x646   :  { %v504_v44 = vpop.f32.mrf.mxu1 }
 0x647   :  { %v505_v45 = vadd.f32 %v504_v44, %v3067_v5 }
 0x648   :  { %v2463_v46 = vpop.f32.mrf.mxu1 }
 0x649   :  { %v511_v47 = vsel %vm385_vm5, %v505_v45, -inf }
 0x64a   :  { %512 = vmax.xlane.f32.xlu0 %v511_v47  ;;  %v507_v48 = vpop.f32.mrf.mxu1 }
 0x64b   :  { %v508_v49 = vadd.f32 %v507_v48, %v3073_v9 }
 0x64c   :  { %v2464_v50 = vpop.f32.mrf.mxu1 }
 0x64d   :  { %v514_v51 = vsel %vm389_vm6, %v508_v49, -inf }
 0x64e   :  { %515 = vmax.xlane.f32.xlu1 %v514_v51 }
 0x65f   :  { %585 = vrot.lane.b32.xlu1 %v3050_v2, %s2842_s22 }
 0x663   :  { %583 = vrot.lane.b32.xlu1 %v3050_v2, %s3534_s2 }
 0x6d3   :  { %v513_v52 = vpop.xlane.xlu0 %512 }
 0x6d4   :  { %v517_v53 = vsub.f32 %v505_v45, %v513_v52 }
 0x6d6   :  { %v519_v54 = vmul.f32 1.442695, %v517_v53 }
 0x6d7   :  { %v516_v55 = vpop.xlane.xlu1 %515 }
 0x6d8   :  { %2733 = vpow2.f32 %v519_v54  ;;  %v518_v56 = vsub.f32 %v508_v49, %v516_v55 }
 0x6da   :  { %v521_v57 = vmul.f32 1.442695, %v518_v56 }
 0x6db   :  { %v586_v8 = vpop.permute.xlu1 %585 }
 0x6dc   :  { %2735 = vpow2.f32 %v521_v57  ;;  %v591_v11 = vsel %vm337_vm4, %v586_v8, 0 }
 0x6df   :  { %v584_v12 = vpop.permute.xlu1 %583 }
 0x6e5   :  { %v2734_v58 = vpop.eup %2733 }
 0x6e6   :  { %v523_v59 = vsel %vm385_vm5, %v2734_v58, 0.0 }
 0x6e7   :  { %524 = vadd.xlane.f32.xlu0 %v523_v59 }
 0x6e9   :  { %v2736_v60 = vpop.eup %2735 }
 0x6ea   :  { %v526_v61 = vsel %vm389_vm6, %v2736_v60, 0.0 }
 0x6eb   :  { %527 = vadd.xlane.f32.xlu0 %v526_v61 }
 0x701   :  { %534 = vrot.lane.b32.xlu0 %v3050_v2, %s3530_s25 }
 0x770   :  { %v525_v62 = vpop.xlane.xlu0 %524 }
 0x771   :  { %2737 = vrcp.f32 %v525_v62 }
 0x774   :  { %v528_v63 = vpop.xlane.xlu0 %527 }
 0x775   :  { %2739 = vrcp.f32 %v528_v63 }
 0x778   :  { %v535_v0 = vpop.permute.xlu0 %534 }
 0x779   :  { %v540_v1 = vsel %vm415_vm7, %v535_v0, 0 }
 0x77a   :  { %2466 = vmatpush3.bf16.msra.mxu1 %v540_v1 }
 0x77b   :  { %2471 = vmatprep.subr.bf16.mxu1 %v2836_v40 }
 0x77e   :  { %v2738_v3 = vpop.eup %2737 }
 0x77f   :  { %v531_v6 = vmul.f32 %v2738_v3, %v2734_v58 }
 0x782   :  { %v2740_v4 = vpop.eup %2739 }
 0x783   :  { %v532_v7 = vmul.f32 %v2740_v4, %v2736_v60 }
 0x785   :  { %v533_v10 = vpack.c.bf16 %v532_v7, %v531_v6 }
 0x787   :  { %2468 = vmatmul.mubr.msk.bf16.vlgmr.msra.gmra.mxu1 %vm385_vm5, %v533_v10 }
 0x788   :  { %2472 = vmatpush3.bf16.xpose.msra.mxu1 %v591_v11  ;;  %2473 = vmatprep.mubr.msk.bf16.mxu1 %vm2837_vm3, %v2836_v40 }
 0x789   :  { %2477 = vmatprep.subr.bf16.mxu1 %v2836_v40 }
 0x78f   :  { %2474 = vmatmul.mubr.msk.bf16.vlgmr.msra.gmra.mxu1 %vm337_vm4, %v584_v12 }
 0x790   :  { %2479 = vmatprep.mubr.msk.bf16.mxu1 %vm2837_vm3, %v2836_v40 }
 0x847   :  { %v3118_v13 = vpop.f32.mrf.mxu1 }
 0x849   :  { %v2469_v14 = vpop.f32.mrf.mxu1 }
 0x84b   :  { %v3120_v15 = vpop.f32.mrf.mxu1 }
 0x84c   :  { %v2649_v16 = vpack.i.bf16 %v3120_v15, %v3118_v13 }
 0x84d   :  { %v2470_v17 = vpop.f32.mrf.mxu1 }
 0x84f   :  { %v627_v18 = vpop.f32.mrf.mxu1 }
 0x850   :  { %v628_v19 = vadd.f32 %v627_v18, %v3067_v5 }
 0x851   :  { %v2475_v20 = vpop.f32.mrf.mxu1 }
 0x852   :  { %v634_v22 = vsel %vm385_vm5, %v628_v19, -inf }
 0x853   :  { %635 = vmax.xlane.f32.xlu1 %v634_v22  ;;  %v630_v23 = vpop.f32.mrf.mxu1 }
 0x854   :  { %v631_v24 = vadd.f32 %v630_v23, %v3073_v9 }
 0x855   :  { %v2476_v25 = vpop.f32.mrf.mxu1 }
 0x856   :  { %v637_v27 = vsel %vm389_vm6, %v631_v24, -inf  ;;  %v2694_v25 = vld [vmem:[%s3509_s8] sm:$0xff]  }
 0x857   :  { %638 = vmax.xlane.f32.xlu0 %v637_v27 }
 0x864   :  { %657 = vrot.lane.b32.xlu1 %v3050_v2, %s3531_s3  ;;  %s3532_s3 = smov 24  }
 0x868   :  { %706 = vrot.lane.b32.xlu1 %v3050_v2, %s3533_s26  ;;  %s3553_s26 = smov 16  }
 0x8dc   :  { %v636_v28 = vpop.xlane.xlu1 %635 }
 0x8dd   :  { %v640_v29 = vsub.f32 %v628_v19, %v636_v28 }
 0x8df   :  { %v642_v30 = vmul.f32 1.442695, %v640_v29 }
 0x8e0   :  { %v658_v31 = vpop.permute.xlu1 %657  ;;  %v639_v32 = vpop.xlane.xlu0 %638 }
 0x8e1   :  { %2741 = vpow2.f32 %v642_v30  ;;  %v663_v33 = vsel %vm415_vm7, %v658_v31, 0  ;;  %v641_v34 = vsub.f32 %v631_v24, %v639_v32 }
 0x8e2   :  { %2478 = vmatpush3.bf16.msra.mxu1 %v663_v33 }
 0x8e3   :  { %v644_v35 = vmul.f32 1.442695, %v641_v34  ;;  %2483 = vmatprep.subr.bf16.mxu1 %v2836_v40 }
 0x8e4   :  { %v707_v52 = vpop.permute.xlu1 %706 }
 0x8e5   :  { %2743 = vpow2.f32 %v644_v35 }
 0x8ee   :  { %v2742_v36 = vpop.eup %2741 }
 0x8ef   :  { %v646_v37 = vsel %vm385_vm5, %v2742_v36, 0.0 }
 0x8f0   :  { %647 = vadd.xlane.f32.xlu0 %v646_v37 }
 0x8f2   :  { %v2744_v38 = vpop.eup %2743 }
 0x8f3   :  { %v649_v41 = vsel %vm389_vm6, %v2744_v38, 0.0 }
 0x8f4   :  { %650 = vadd.xlane.f32.xlu0 %v649_v41 }
 0x90a   :  { %708 = vrot.lane.b32.xlu0 %v3050_v2, %s2847_s4 }
 0x979   :  { %v648_v43 = vpop.xlane.xlu0 %647 }
 0x97a   :  { %2745 = vrcp.f32 %v648_v43 }
 0x97d   :  { %v651_v44 = vpop.xlane.xlu0 %650 }
 0x97e   :  { %2747 = vrcp.f32 %v651_v44 }
 0x981   :  { %v709_v49 = vpop.permute.xlu0 %708 }
 0x982   :  { %v714_v51 = vsel %vm337_vm4, %v709_v49, 0 }
 0x987   :  { %v2746_v45 = vpop.eup %2745 }
 0x988   :  { %v654_v47 = vmul.f32 %v2746_v45, %v2742_v36 }
 0x98b   :  { %v2748_v46 = vpop.eup %2747 }
 0x98c   :  { %v655_v48 = vmul.f32 %v2748_v46, %v2744_v38 }
 0x98e   :  { %v656_v50 = vpack.c.bf16 %v655_v48, %v654_v47 }
 0x990   :  { %2480 = vmatmul.mubr.msk.bf16.vlgmr.msra.gmra.mxu1 %vm385_vm5, %v656_v50 }
 0x991   :  { %2484 = vmatpush3.bf16.xpose.msra.mxu1 %v714_v51  ;;  %2485 = vmatprep.mubr.msk.bf16.mxu1 %vm2837_vm3, %v2836_v40 }
 0x992   :  { %2495 = vmatprep.subr.bf16.mxu1 %v2836_v40 }
 0x998   :  { %2486 = vmatmul.mubr.msk.bf16.vlgmr.msra.gmra.mxu1 %vm337_vm4, %v707_v52 }
 0x999   :  { %2499 = vmatprep.mubr.msk.bf16.mxu1 %vm2837_vm3, %v2836_v40 }
 0xa50   :  { %v699_v53 = vpop.f32.mrf.mxu1 }
 0xa52   :  { %v2481_v54 = vpop.f32.mrf.mxu1 }
 0xa54   :  { %v702_v55 = vpop.f32.mrf.mxu1 }
 0xa55   :  { %v2654_v56 = vpack.i.bf16 %v702_v55, %v699_v53 }
 0xa56   :  { %v2482_v57 = vpop.f32.mrf.mxu1 }
 0xa58   :  { %v750_v58 = vpop.f32.mrf.mxu1 }
 0xa59   :  { %v751_v59 = vadd.f32 %v750_v58, %v3067_v5 }
 0xa5a   :  { %v2487_v60 = vpop.f32.mrf.mxu1 }
 0xa5b   :  { %v757_v61 = vsel %vm385_vm5, %v751_v59, -inf }
 0xa5c   :  { %758 = vmax.xlane.f32.xlu1 %v757_v61  ;;  %v753_v62 = vpop.f32.mrf.mxu1 }
 0xa5d   :  { %v754_v63 = vadd.f32 %v753_v62, %v3073_v9 }
 0xa5e   :  { %v2488_v0 = vpop.f32.mrf.mxu1 }
 0xa5f   :  { %v760_v1 = vsel %vm389_vm6, %v754_v63, -inf }
 0xa60   :  { %761 = vmax.xlane.f32.xlu0 %v760_v1 }
 0xae5   :  { %v759_v3 = vpop.xlane.xlu1 %758 }
 0xae6   :  { %v763_v4 = vsub.f32 %v751_v59, %v759_v3 }
 0xae8   :  { %v765_v6 = vmul.f32 1.442695, %v763_v4 }
 0xae9   :  { %v762_v7 = vpop.xlane.xlu0 %761 }
 0xaea   :  { %2749 = vpow2.f32 %v765_v6  ;;  %v764_v8 = vsub.f32 %v754_v63, %v762_v7  ;;  %v2695_v6 = vld [vmem:[%s3513_s12 + $0x8] sm:$0xff]   ;;  %v2696_v7 = vld [vmem:[%s3513_s12] sm:$0xff]  }
 0xaec   :  { %v767_v10 = vmul.f32 1.442695, %v764_v8 }
 0xaee   :  { %2751 = vpow2.f32 %v767_v10 }
 0xaf7   :  { %v2750_v11 = vpop.eup %2749 }
 0xaf8   :  { %v769_v12 = vsel %vm385_vm5, %v2750_v11, 0.0 }
 0xaf9   :  { %770 = vadd.xlane.f32.xlu0 %v769_v12 }
 0xafb   :  { %v2752_v14 = vpop.eup %2751 }
 0xafc   :  { %v772_v17 = vsel %vm389_vm6, %v2752_v14, 0.0 }
 0xafd   :  { %773 = vadd.xlane.f32.xlu1 %v772_v17 }
 0xb0e   :  { %2650 = vrot.lane.b32.xlu1 %v2649_v16, %s3528_s29  ;;  %s3551_s29 = smov 40  }
 0xb0f   :  { %780 = vrot.lane.b32.xlu0 %v3050_v2, %s3529_s0  ;;  %v2693_v2 = vld [vmem:[%s3509_s8 + $0x8] sm:$0xff]  }
 0xb10   :  { %2496 = vmatpush3.bf16.msra.mxu1 %v2693_v2 }
 0xb11   :  { %2497 = vmatprep.subr.bf16.mxu1 %v2836_v40 }
 0xb12   :  { %2655 = vrot.lane.b32.xlu1 %v2654_v56, %s3527_s21  ;;  %s3554_s21 = smov 24  }
 0xb14   :  { %2498 = vmatpush3.bf16.msra.mxu1 %v2694_v25 }
 0xb15   :  { %2511 = vmatprep.subr.bf16.mxu1 %v2836_v40 }
 0xb82   :  { %v771_v18 = vpop.xlane.xlu0 %770 }
 0xb83   :  { %2753 = vrcp.f32 %v771_v18 }
 0xb86   :  { %v774_v19 = vpop.xlane.xlu1 %773  ;;  %v781_v20 = vpop.permute.xlu0 %780 }
 0xb87   :  { %2755 = vrcp.f32 %v774_v19  ;;  %v786_v22 = vsel %vm415_vm7, %v781_v20, 0  ;;  %v2278_v20 = vld [vmem:[%s3511_s10] ss:$0 sm:$0xff] }
 0xb88   :  { %2490 = vmatpush3.bf16.msra.mxu0 %v786_v22 }
 0xb89   :  { %2503 = vmatprep.subr.bf16.mxu0 %v2836_v40 }
 0xb8a   :  { %v2651_v32 = vpop.permute.xlu1 %2650 }
 0xb8b   :  { %v2653_v34 = vunpack.i.h.bf16 %v2651_v32  ;;  %v2652_v35 = vunpack.i.l.bf16 %v2651_v32  ;;  %v2702_v32 = vld [vmem:[%s3515_s14 + $0x10] sm:$0xff]  }
 0xb8d   :  { %v854_v41 = vsel %vm337_vm4, %v3094_v42, %v2653_v34  ;;  %v853_v43 = vsel %vm337_vm4, %v3092_v39, %v2652_v35  ;;  %v2274_v39 = vld [vmem:[%s3510_s9] ss:$0 sm:$0xff] }
 0xb8e   :  { %v2656_v33 = vpop.permute.xlu1 %2655  ;;  %v2704_v34 = vld [vmem:[%s3515_s14] sm:$0xff]  }
 0xb8f   :  { %v2658_v36 = vunpack.i.h.bf16 %v2656_v33  ;;  %v2657_v37 = vunpack.i.l.bf16 %v2656_v33  ;;  %v2703_v33 = vld [vmem:[%s3515_s14 + $0x8] sm:$0xff]   ;;  %v2280_v35 = vld [vmem:[%s3514_s13] ss:$0 sm:$0xff] }
 0xb90   :  { %v2754_v23 = vpop.eup %2753 }
 0xb91   :  { %v777_v15 = vmul.f32 %v2754_v23, %v2750_v11  ;;  %v856_v46 = vsel %vm855_vm8, %v853_v43, %v2657_v37  ;;  %v857_v47 = vsel %vm855_vm8, %v854_v41, %v2658_v36 }
 0xb94   :  { %v2756_v13 = vpop.eup %2755 }
 0xb95   :  { %v778_v16 = vmul.f32 %v2756_v13, %v2752_v14 }
 0xb97   :  { %v779_v24 = vpack.c.bf16 %v778_v16, %v777_v15  ;;  %v2279_v15 = vld [vmem:[%s3512_s11] ss:$0 sm:$0xff] }
 0xb99   :  { %2492 = vmatmul.mubr.msk.bf16.vlgmr.msra.gmra.mxu0 %vm385_vm5, %v779_v24 }
 0xb9a   :  { %2507 = vmatprep.mubr.msk.bf16.mxu0 %vm2837_vm3, %v2836_v40  ;;  %2504 = vmatpush3.bf16.msra.mxu0 %v2695_v6 }
 0xb9b   :  { %2505 = vmatprep.subr.bf16.mxu0 %v2836_v40 }
 0xb9e   :  { %2506 = vmatpush3.bf16.msra.mxu0 %v2696_v7 }
 0xb9f   :  { %2531 = vmatprep.subr.bf16.mxu0 %v2836_v40 }
 0xc59   :  { %v822_v27 = vpop.f32.mrf.mxu0 }
 0xc5b   :  { %v2493_v28 = vpop.f32.mrf.mxu0 }
 0xc5c   :  { %v2698_v28 = vld [vmem:[%s3515_s14 + $0x30] sm:$0xff]  }
 0xc5d   :  { %v825_v29 = vpop.f32.mrf.mxu0 }
 0xc5e   :  { %v2659_v30 = vpack.i.bf16 %v825_v29, %v822_v27  ;;  %v2697_v27 = vld [vmem:[%s3515_s14 + $0x38] sm:$0xff]   ;;  %v2699_v29 = vld [vmem:[%s3515_s14 + $0x28] sm:$0xff]  }
 0xc5f   :  { %v2494_v31 = vpop.f32.mrf.mxu0 }
 0xc60   :  { %2660 = vrot.lane.b32.xlu1 %v2659_v30, %s3532_s3  ;;  %v2700_v30 = vld [vmem:[%s3515_s14 + $0x20] sm:$0xff]   ;;  %v2701_v31 = vld [vmem:[%s3515_s14 + $0x18] sm:$0xff]   ;;  %s3552_s3 = smov 8  }
 0xcd2   :  { %v2661_v38 = vpop.permute.xlu1 %2660 }
 0xcd3   :  { %v2663_v44 = vunpack.i.h.bf16 %v2661_v38  ;;  %v2662_v45 = vunpack.i.l.bf16 %v2661_v38 }
 0xcd5   :  { %v860_v48 = vsel %vm858_vm9, %v857_v47, %v2663_v44  ;;  %v859_v49 = vsel %vm858_vm9, %v856_v46, %v2662_v45 }
 0xcd6   :  { %v861_v50 = vpack.c.bf16 %v860_v48, %v859_v49 }
 0xcd8   :  { %2500 = vmatmul.mubr.msk.bf16.vlgmr.msra.gmra.mxu1 %vm220_vm1, %v861_v50 }
 0xcd9   :  { %2527 = vmatprep.mubr.msk.bf16.mxu1 %vm2837_vm3, %v2836_v40  ;;  %2512 = vmatpush3.bf16.msra.mxu1 %v2697_v27 }
 0xcda   :  { %2513 = vmatprep.subr.bf16.mxu1 %v2836_v40 }
 0xcdd   :  { %2514 = vmatpush3.bf16.msra.mxu1 %v2698_v28 }
 0xcde   :  { %2515 = vmatprep.subr.bf16.mxu1 %v2836_v40 }
 0xce1   :  { %2516 = vmatpush3.bf16.msra.mxu1 %v2699_v29 }
 0xce2   :  { %2517 = vmatprep.subr.bf16.mxu1 %v2836_v40 }
 0xce5   :  { %2518 = vmatpush3.bf16.msra.mxu1 %v2700_v30 }
 0xce6   :  { %2519 = vmatprep.subr.bf16.mxu1 %v2836_v40 }
 0xce9   :  { %2520 = vmatpush3.bf16.msra.mxu1 %v2701_v31  ;;  %v2295_v31 = vld [vmem:[%s3544_s24 + $0x1] ss:$0 sm:$0xff]  ;;  %s3548_s24 = smov 104  }
 0xcea   :  { %2521 = vmatprep.subr.bf16.mxu1 %v2836_v40 }
 0xced   :  { %2522 = vmatpush3.bf16.msra.mxu1 %v2702_v32 }
 0xcee   :  { %2523 = vmatprep.subr.bf16.mxu1 %v2836_v40 }
 0xcf1   :  { %2524 = vmatpush3.bf16.msra.mxu1 %v2703_v33 }
 0xcf2   :  { %2525 = vmatprep.subr.bf16.mxu1 %v2836_v40 }
 0xcf5   :  { %2526 = vmatpush3.bf16.msra.mxu1 %v2704_v34 }
 0xcf6   :  { %2557 = vmatprep.subr.bf16.mxu1 %v2836_v40 }
 0xd98   :  { %v922_v42 = vpop.f32.mrf.mxu1 }
 0xd99   :  { %v923_v51 = vadd.f32 %v2274_v39, %v922_v42 }
 0xd9a   :  { %v2501_v52 = vpop.f32.mrf.mxu1 }
 0xd9b   :  { %v3188_v53 = vadd.f32 %v923_v51, %v3009_v21 }
 0xd9c   :  { %v925_v54 = vpop.f32.mrf.mxu1 }
 0xd9d   :  { %v926_v55 = vadd.f32 %v2274_v39, %v925_v54  ;;  %v933_v56 = vsel %vm220_vm1, %v3188_v53, 0.0 }
 0xd9e   :  { %934 = vadd.xlane.f32.xlu0 %v933_v56  ;;  %v2502_v57 = vpop.f32.mrf.mxu1 }
 0xd9f   :  { %v3193_v58 = vadd.f32 %v926_v55, %v3016_v26 }
 0xda1   :  { %v936_v59 = vsel %vm224_vm2, %v3193_v58, 0.0 }
 0xda2   :  { %937 = vadd.xlane.f32.xlu1 %v936_v59 }
 0xe27   :  { %v935_v60 = vpop.xlane.xlu0 %934 }
 0xe28   :  { %v939_v61 = vmul.f32 0.03125, %v935_v60 }
 0xe2a   :  { %v941_v62 = vsub.f32 %v3188_v53, %v939_v61 }
 0xe2b   :  { %v938_v21 = vpop.xlane.xlu1 %937 }
 0xe2c   :  { %v940_v63 = vmul.f32 0.03125, %v938_v21  ;;  %v943_v0 = vmul.f32 %v941_v62, %v941_v62 }
 0xe2e   :  { %v942_v1 = vsub.f32 %v3193_v58, %v940_v63  ;;  %v945_v3 = vsel %vm220_vm1, %v943_v0, 0.0  ;;  %v2284_v63 = vld [vmem:[%s3516_s15] ss:$0 sm:$0xff] }
 0xe2f   :  { %946 = vadd.xlane.f32.xlu0 %v945_v3 }
 0xe30   :  { %v944_v4 = vmul.f32 %v942_v1, %v942_v1 }
 0xe32   :  { %v948_v26 = vsel %vm224_vm2, %v944_v4, 0.0 }
 0xe33   :  { %949 = vadd.xlane.f32.xlu0 %v948_v26 }
 0xeb8   :  { %v947_v8 = vpop.xlane.xlu0 %946 }
 0xeb9   :  { %v951_v10 = vmul.f32 0.03125, %v947_v8 }
 0xebb   :  { %v953_v11 = vadd.f32 1e-12, %v951_v10 }
 0xebc   :  { %v950_v12 = vpop.xlane.xlu0 %949 }
 0xebd   :  { %2757 = vrsqrt.f32 %v953_v11  ;;  %v952_v14 = vmul.f32 0.03125, %v950_v12 }
 0xebf   :  { %v954_v17 = vadd.f32 1e-12, %v952_v14 }
 0xec1   :  { %2759 = vrsqrt.f32 %v954_v17 }
 0xeca   :  { %v2758_v18 = vpop.eup %2757 }
 0xecb   :  { %v957_v19 = vmul.f32 %v2758_v18, %v941_v62 }
 0xecd   :  { %v965_v13 = vmul.f32 %v2278_v20, %v957_v19 }
 0xece   :  { %v2760_v22 = vpop.eup %2759 }
 0xecf   :  { %v958_v23 = vmul.f32 %v2760_v22, %v942_v1  ;;  %v973_v24 = vadd.f32 %v2279_v15, %v965_v13  ;;  %v2705_v13 = vld [vmem:[%s3507_s6 + $0x18] sm:$0xff]  }
 0xed1   :  { %v966_v16 = vmul.f32 %v2278_v20, %v958_v23 }
 0xed3   :  { %v974_v2 = vadd.f32 %v2279_v15, %v966_v16  ;;  %v2706_v15 = vld [vmem:[%s3507_s6 + $0x10] sm:$0xff]  }
 0xed5   :  { %v975_v25 = vpack.c.bf16 %v974_v2, %v973_v24 }
 0xed7   :  { %2508 = vmatmul.mubr.msk.bf16.vlgmr.msra.gmra.mxu0 %vm220_vm1, %v975_v25 }
 0xed8   :  { %2535 = vmatprep.mubr.msk.bf16.mxu0 %vm2837_vm3, %v2836_v40  ;;  %2532 = vmatpush3.bf16.msra.mxu0 %v2705_v13 }
 0xed9   :  { %2533 = vmatprep.subr.bf16.mxu0 %v2836_v40 }
 0xedc   :  { %2534 = vmatpush3.bf16.msra.mxu0 %v2706_v15 }
 0xedd   :  { %2539 = vmatprep.subr.bf16.mxu0 %v2836_v40 }
 0xf97   :  { %v1036_v36 = vpop.f32.mrf.mxu0 }
 0xf98   :  { %v1037_v37 = vadd.f32 %v2280_v35, %v1036_v36 }
 0xf99   :  { %v2509_v38 = vpop.f32.mrf.mxu0 }
 0xf9a   :  { %v1045_v41 = vmul.f32 0.044715, %v1037_v37  ;;  %v1043_v57 = vmul.f32 0.5, %v1037_v37 }
 0xf9b   :  { %v1039_v43 = vpop.f32.mrf.mxu0 }
 0xf9c   :  { %v1047_v44 = vmul.f32 %v1045_v41, %v1037_v37  ;;  %v1040_v45 = vadd.f32 %v2280_v35, %v1039_v43  ;;  %v2296_v35 = vld [vmem:[%s3506_s5 + $0x1] ss:$0 sm:$0xff]  ;;  %s3546_s5 = smov 64  }
 0xf9d   :  { %v2510_v46 = vpop.f32.mrf.mxu0 }
 0xf9e   :  { %v1049_v47 = vmul.f32 %v1047_v44, %v1037_v37  ;;  %v1046_v48 = vmul.f32 0.044715, %v1040_v45  ;;  %v1044_v59 = vmul.f32 0.5, %v1040_v45  ;;  %v2302_v44 = vld [vmem:[%s3508_s7 + $0x1] ss:$0 sm:$0xff]  ;;  %s3547_s7 = smov 112  }
 0xfa0   :  { %v1051_v49 = vadd.f32 %v1049_v47, %v1037_v37  ;;  %v1048_v50 = vmul.f32 %v1046_v48, %v1040_v45 }
 0xfa2   :  { %v1053_v39 = vmul.f32 0.7978846, %v1051_v49  ;;  %v1050_v42 = vmul.f32 %v1048_v50, %v1040_v45 }
 0xfa4   :  { %2761 = vtanh.f32 %v1053_v39  ;;  %v1052_v51 = vadd.f32 %v1050_v42, %v1040_v45 }
 0xfa6   :  { %v1054_v52 = vmul.f32 0.7978846, %v1052_v51 }
 0xfa8   :  { %2763 = vtanh.f32 %v1054_v52 }
 0xfb1   :  { %v2762_v54 = vpop.eup %2761 }
 0xfb2   :  { %v1057_v55 = vadd.f32 1.0, %v2762_v54 }
 0xfb4   :  { %v1059_v61 = vmul.f32 %v1057_v55, %v1043_v57 }
 0xfb5   :  { %v2764_v56 = vpop.eup %2763 }
 0xfb6   :  { %v1058_v60 = vadd.f32 1.0, %v2764_v56 }
 0xfb8   :  { %v1060_v62 = vmul.f32 %v1058_v60, %v1044_v59 }
 0xfba   :  { %v1061_v21 = vpack.c.bf16 %v1060_v62, %v1059_v61 }
 0xfbc   :  { %2528 = vmatmul.mubr.bf16.vlgmr.msra.gmra.mxu1 %v1061_v21 }
 0xfbd   :  { %2559 = vmatprep.mubr.msk.bf16.mxu1 %vm2837_vm3, %v2836_v40 }
0x107c   :  { %v1167_v0 = vpop.f32.mrf.mxu1 }
0x107d   :  { %v1168_v1 = vadd.f32 %v2284_v63, %v1167_v0 }
0x107e   :  { %v2529_v3 = vpop.f32.mrf.mxu1 }
0x107f   :  { %v3259_v4 = vadd.f32 %v1168_v1, %v3188_v53 }
0x1080   :  { %v1170_v26 = vpop.f32.mrf.mxu1 }
0x1081   :  { %v1171_v6 = vadd.f32 %v2284_v63, %v1170_v26  ;;  %v1180_v7 = vsel %vm220_vm1, %v3259_v4, 0.0 }
0x1082   :  { %1181 = vadd.xlane.f32.xlu0 %v1180_v7  ;;  %v2530_v8 = vpop.f32.mrf.mxu1 }
0x1083   :  { %v3264_v10 = vadd.f32 %v1171_v6, %v3193_v58 }
0x1085   :  { %v1183_v11 = vsel %vm224_vm2, %v3264_v10, 0.0 }
0x1086   :  { %1184 = vadd.xlane.f32.xlu1 %v1183_v11 }
0x110b   :  { %v1182_v12 = vpop.xlane.xlu0 %1181 }
0x110c   :  { %v1186_v14 = vmul.f32 0.03125, %v1182_v12 }
0x110e   :  { %v1188_v17 = vsub.f32 %v3259_v4, %v1186_v14 }
0x110f   :  { %v1185_v53 = vpop.xlane.xlu1 %1184 }
0x1110   :  { %v1187_v18 = vmul.f32 0.03125, %v1185_v53  ;;  %v1190_v19 = vmul.f32 %v1188_v17, %v1188_v17 }
0x1112   :  { %v1189_v20 = vsub.f32 %v3264_v10, %v1187_v18  ;;  %v1192_v22 = vsel %vm220_vm1, %v1190_v19, 0.0 }
0x1113   :  { %1193 = vadd.xlane.f32.xlu0 %v1192_v22 }
0x1114   :  { %v1191_v23 = vmul.f32 %v1189_v20, %v1189_v20 }
0x1116   :  { %v1195_v58 = vsel %vm224_vm2, %v1191_v23, 0.0 }
0x1117   :  { %1196 = vadd.xlane.f32.xlu1 %v1195_v58 }
0x119c   :  { %v1194_v16 = vpop.xlane.xlu0 %1193 }
0x119d   :  { %v1198_v24 = vmul.f32 0.03125, %v1194_v16 }
0x119f   :  { %v1200_v2 = vadd.f32 1e-12, %v1198_v24 }
0x11a0   :  { %v1197_v25 = vpop.xlane.xlu1 %1196 }
0x11a1   :  { %2765 = vrsqrt.f32 %v1200_v2  ;;  %v1199_v27 = vmul.f32 0.03125, %v1197_v25 }
0x11a3   :  { %v1201_v28 = vadd.f32 1e-12, %v1199_v27 }
0x11a5   :  { %2767 = vrsqrt.f32 %v1201_v28 }
0x11ae   :  { %v2766_v29 = vpop.eup %2765 }
0x11af   :  { %v1204_v30 = vmul.f32 %v2766_v29, %v1188_v17 }
0x11b1   :  { %v1212_v34 = vmul.f32 %v2295_v31, %v1204_v30 }
0x11b2   :  { %v2768_v32 = vpop.eup %2767 }
0x11b3   :  { %v1205_v33 = vmul.f32 %v2768_v32, %v1189_v20  ;;  %v1220_v37 = vadd.f32 %v2296_v35, %v1212_v34 }
0x11b5   :  { %v1213_v36 = vmul.f32 %v2295_v31, %v1205_v33 }
0x11b7   :  { %v1221_v38 = vadd.f32 %v2296_v35, %v1213_v36 }
0x11b9   :  { %v1222_v41 = vpack.c.bf16 %v1221_v38, %v1220_v37 }
0x11bb   :  { %2536 = vmatmul.mubr.msk.bf16.vlgmr.msra.gmra.mxu0 %vm220_vm1, %v1222_v41 }
0x11bc   :  { %2541 = vmatprep.mubr.msk.bf16.mxu0 %vm2837_vm3, %v2836_v40 }
0x127b   :  { %v1285_v43 = vpop.f32.mrf.mxu0 }
0x127c   :  { %v1286_v47 = vadd.f32 %v2302_v44, %v1285_v43 }
0x127d   :  { %v2537_v45 = vpop.f32.mrf.mxu0 }
0x127f   :  { %v1288_v46 = vpop.f32.mrf.mxu0 }
0x1280   :  { %v1289_v48 = vadd.f32 %v2302_v44, %v1288_v46 }
0x1281   :  { %v2538_v49 = vpop.f32.mrf.mxu0 }
0x1282   :  { %v3292_v50 = vpack.c.bf16 %v1289_v48, %v1286_v47 }
0x1284   :  { %1294 = vrot.lane.b32.xlu0 %v3292_v50, %s2838_s27 }
0x1288   :  { %1417 = vrot.lane.b32.xlu0 %v3292_v50, %s2839_s28 }
0x128c   :  { %1415 = vrot.lane.b32.xlu0 %v3292_v50, %s2840_s23 }
0x1290   :  { %1540 = vrot.lane.b32.xlu0 %v3292_v50, %s2842_s22 }
0x1294   :  { %1663 = vrot.lane.b32.xlu0 %v3292_v50, %s2847_s4  ;;  %s3550_s4 = smov 56  }
0x12f6   :  { %v1295_v39 = vpop.permute.xlu0 %1294 }
0x12f7   :  { %v1300_v42 = vsel %vm337_vm4, %v1295_v39, 0 }
0x12f8   :  { %2540 = vmatpush3.bf16.xpose.msra.mxu0 %v1300_v42  ;;  %v2811_v42 = vld [vmem:[%s3545_s30] sm:$0xff] }
0x12f9   :  { %2545 = vmatprep.subr.bf16.mxu0 %v2836_v40 }
0x12fa   :  { %v1418_v53 = vpop.permute.xlu0 %1417 }
0x12fb   :  { %v1423_v58 = vsel %vm337_vm4, %v1418_v53, 0 }
0x12fe   :  { %v1416_v23 = vpop.permute.xlu0 %1415 }
0x12ff   :  { %2542 = vmatmul.mubr.msk.bf16.vlgmr.msra.gmra.mxu0 %vm337_vm4, %v3292_v50 }
0x1300   :  { %2547 = vmatprep.mubr.msk.bf16.mxu0 %vm2837_vm3, %v2836_v40 }
0x1302   :  { %v1541_v13 = vpop.permute.xlu0 %1540 }
0x1303   :  { %v1546_v15 = vsel %vm337_vm4, %v1541_v13, 0 }
0x1306   :  { %v1664_v16 = vpop.permute.xlu0 %1663 }
0x1307   :  { %v1669_v2 = vsel %vm337_vm4, %v1664_v16, 0 }
0x13bf   :  { %v1336_v51 = vpop.f32.mrf.mxu0 }
0x13c0   :  { %v1337_v52 = vadd.f32 %v1336_v51, %v3067_v5 }
0x13c1   :  { %v2543_v54 = vpop.f32.mrf.mxu0 }
0x13c2   :  { %v1343_v55 = vsel %vm385_vm5, %v1337_v52, -inf }
0x13c3   :  { %1344 = vmax.xlane.f32.xlu1 %v1343_v55  ;;  %v1339_v56 = vpop.f32.mrf.mxu0  ;;  %v2812_v55 = vld [vmem:[%s3545_s30 + $0x8] sm:$0x3]  ;;  %s3549_s30 = smov 48  }
0x13c4   :  { %v1340_v57 = vadd.f32 %v1339_v56, %v3073_v9 }
0x13c5   :  { %v2544_v59 = vpop.f32.mrf.mxu0 }
0x13c6   :  { %v1346_v60 = vsel %vm389_vm6, %v1340_v57, -inf }
0x13c7   :  { %1347 = vmax.xlane.f32.xlu1 %v1346_v60 }
0x144c   :  { %v1345_v61 = vpop.xlane.xlu1 %1344 }
0x144d   :  { %v1349_v62 = vsub.f32 %v1337_v52, %v1345_v61 }
0x144f   :  { %v1351_v21 = vmul.f32 1.442695, %v1349_v62 }
0x1450   :  { %v1348_v63 = vpop.xlane.xlu1 %1347 }
0x1451   :  { %2769 = vpow2.f32 %v1351_v21  ;;  %v1350_v0 = vsub.f32 %v1340_v57, %v1348_v63 }
0x1453   :  { %v1353_v1 = vmul.f32 1.442695, %v1350_v0 }
0x1455   :  { %2771 = vpow2.f32 %v1353_v1 }
0x145e   :  { %v2770_v3 = vpop.eup %2769 }
0x145f   :  { %v1355_v26 = vsel %vm385_vm5, %v2770_v3, 0.0 }
0x1460   :  { %1356 = vadd.xlane.f32.xlu1 %v1355_v26 }
0x1462   :  { %v2772_v6 = vpop.eup %2771 }
0x1463   :  { %v1358_v7 = vsel %vm389_vm6, %v2772_v6, 0.0 }
0x1464   :  { %1359 = vadd.xlane.f32.xlu1 %v1358_v7 }
0x1475   :  { %1366 = vrot.lane.b32.xlu1 %v3292_v50, %s3546_s5 }
0x1479   :  { %1538 = vrot.lane.b32.xlu1 %v3292_v50, %s3547_s7 }
0x147d   :  { %1661 = vrot.lane.b32.xlu1 %v3292_v50, %s3548_s24 }
0x14e9   :  { %v1357_v8 = vpop.xlane.xlu1 %1356 }
0x14ea   :  { %2773 = vrcp.f32 %v1357_v8 }
0x14ed   :  { %v1360_v11 = vpop.xlane.xlu1 %1359 }
0x14ee   :  { %2775 = vrcp.f32 %v1360_v11 }
0x14f1   :  { %v1367_v12 = vpop.permute.xlu1 %1366 }
0x14f2   :  { %v1372_v14 = vsel %vm415_vm7, %v1367_v12, 0 }
0x14f3   :  { %2546 = vmatpush3.bf16.msra.mxu0 %v1372_v14 }
0x14f4   :  { %2551 = vmatprep.subr.bf16.mxu0 %v2836_v40 }
0x14f5   :  { %v1539_v24 = vpop.permute.xlu1 %1538 }
0x14f7   :  { %v2774_v17 = vpop.eup %2773 }
0x14f8   :  { %v1363_v19 = vmul.f32 %v2774_v17, %v2770_v3 }
0x14f9   :  { %v1662_v25 = vpop.permute.xlu1 %1661 }
0x14fb   :  { %v2776_v18 = vpop.eup %2775 }
0x14fc   :  { %v1364_v20 = vmul.f32 %v2776_v18, %v2772_v6 }
0x14fe   :  { %v1365_v22 = vpack.c.bf16 %v1364_v20, %v1363_v19 }
0x1500   :  { %2548 = vmatmul.mubr.msk.bf16.vlgmr.msra.gmra.mxu0 %vm385_vm5, %v1365_v22 }
0x1501   :  { %2552 = vmatpush3.bf16.xpose.msra.mxu0 %v1423_v58  ;;  %2553 = vmatprep.mubr.msk.bf16.mxu0 %vm2837_vm3, %v2836_v40 }
0x1502   :  { %2563 = vmatprep.subr.bf16.mxu0 %v2836_v40 }
0x1508   :  { %2554 = vmatmul.mubr.msk.bf16.vlgmr.msra.gmra.mxu0 %vm337_vm4, %v1416_v23 }
0x1509   :  { %2564 = vmatpush3.bf16.xpose.msra.mxu0 %v1546_v15  ;;  %2565 = vmatprep.mubr.msk.bf16.mxu0 %vm2837_vm3, %v2836_v40 }
0x150a   :  { %2575 = vmatprep.subr.bf16.mxu0 %v2836_v40 }
0x1510   :  { %2566 = vmatmul.mubr.msk.bf16.vlgmr.msra.gmra.mxu0 %vm337_vm4, %v1539_v24 }
0x1511   :  { %2576 = vmatpush3.bf16.xpose.msra.mxu0 %v1669_v2  ;;  %2577 = vmatprep.mubr.msk.bf16.mxu0 %vm2837_vm3, %v2836_v40 }
0x1512   :  { %2587 = vmatprep.subr.bf16.mxu0 %v2836_v40 }
0x1518   :  { %2578 = vmatmul.mubr.msk.bf16.vlgmr.msra.gmra.mxu0 %vm337_vm4, %v1662_v25 }
0x1519   :  { %2591 = vmatprep.mubr.msk.bf16.mxu0 %vm2837_vm3, %v2836_v40 }
0x15c0   :  { %v3342_v27 = vpop.f32.mrf.mxu0 }
0x15c2   :  { %v2549_v28 = vpop.f32.mrf.mxu0 }
0x15c4   :  { %v3344_v29 = vpop.f32.mrf.mxu0 }
0x15c6   :  { %v2550_v30 = vpop.f32.mrf.mxu0 }
0x15c8   :  { %v1459_v31 = vpop.f32.mrf.mxu0 }
0x15c9   :  { %v1460_v32 = vadd.f32 %v1459_v31, %v3067_v5 }
0x15ca   :  { %v2555_v33 = vpop.f32.mrf.mxu0 }
0x15cb   :  { %v1466_v34 = vsel %vm385_vm5, %v1460_v32, -inf }
0x15cc   :  { %1467 = vmax.xlane.f32.xlu0 %v1466_v34  ;;  %v1462_v35 = vpop.f32.mrf.mxu0 }
0x15cd   :  { %v1463_v36 = vadd.f32 %v1462_v35, %v3073_v9 }
0x15ce   :  { %v2556_v37 = vpop.f32.mrf.mxu0 }
0x15cf   :  { %v1469_v38 = vsel %vm389_vm6, %v1463_v36, -inf }
0x15d0   :  { %1470 = vmax.xlane.f32.xlu1 %v1469_v38  ;;  %v1582_v41 = vpop.f32.mrf.mxu0 }
0x15d1   :  { %v1583_v43 = vadd.f32 %v1582_v41, %v3067_v5 }
0x15d2   :  { %v2567_v44 = vpop.f32.mrf.mxu0 }
0x15d3   :  { %v1589_v45 = vsel %vm385_vm5, %v1583_v43, -inf }
0x15d4   :  { %1590 = vmax.xlane.f32.xlu0 %v1589_v45  ;;  %v1585_v46 = vpop.f32.mrf.mxu0 }
0x15d5   :  { %v1586_v47 = vadd.f32 %v1585_v46, %v3073_v9 }
0x15d6   :  { %v2568_v48 = vpop.f32.mrf.mxu0 }
0x15d7   :  { %v1592_v49 = vsel %vm389_vm6, %v1586_v47, -inf }
0x15d8   :  { %1593 = vmax.xlane.f32.xlu0 %v1592_v49  ;;  %v1705_v39 = vpop.f32.mrf.mxu0 }
0x15d9   :  { %v1706_v51 = vadd.f32 %v2811_v42, %v1705_v39 }
0x15da   :  { %v2579_v52 = vpop.f32.mrf.mxu0 }
0x15db   :  { %v1712_v5 = vsel %vm385_vm5, %v1706_v51, -inf }
0x15dc   :  { %1713 = vmax.xlane.f32.xlu0 %v1712_v5  ;;  %v1708_v54 = vpop.f32.mrf.mxu0 }
0x15dd   :  { %v1709_v9 = vadd.f32 %v2812_v55, %v1708_v54 }
0x15de   :  { %v2580_v56 = vpop.f32.mrf.mxu0 }
0x15df   :  { %v1715_v57 = vsel %vm389_vm6, %v1709_v9, -inf }
0x15e0   :  { %1716 = vmax.xlane.f32.xlu1 %v1715_v57 }
0x1655   :  { %v1468_v59 = vpop.xlane.xlu0 %1467 }
0x1656   :  { %v1472_v60 = vsub.f32 %v1460_v32, %v1468_v59 }
0x1658   :  { %v1474_v61 = vmul.f32 1.442695, %v1472_v60  ;;  %v2707_v60 = vld [vmem:[%s3509_s8 + $0x18] sm:$0xff]  }
0x1659   :  { %v1471_v62 = vpop.xlane.xlu1 %1470  ;;  %2588 = vmatpush3.bf16.msra.mxu0 %v2707_v60 }
0x165a   :  { %2777 = vpow2.f32 %v1474_v61  ;;  %v1473_v21 = vsub.f32 %v1463_v36, %v1471_v62  ;;  %2589 = vmatprep.subr.bf16.mxu0 %v2836_v40 }
0x165c   :  { %v1476_v63 = vmul.f32 1.442695, %v1473_v21 }
0x165d   :  { %v1591_v0 = vpop.xlane.xlu0 %1590 }
0x165e   :  { %2779 = vpow2.f32 %v1476_v63  ;;  %v1595_v1 = vsub.f32 %v1583_v43, %v1591_v0 }
0x1660   :  { %v1597_v3 = vmul.f32 1.442695, %v1595_v1 }
0x1661   :  { %v1594_v26 = vpop.xlane.xlu0 %1593 }
0x1662   :  { %2781 = vpow2.f32 %v1597_v3  ;;  %v1596_v6 = vsub.f32 %v1586_v47, %v1594_v26  ;;  %v2708_v26 = vld [vmem:[%s3509_s8 + $0x10] sm:$0xff]  }
0x1663   :  { %2590 = vmatpush3.bf16.msra.mxu0 %v2708_v26  ;;  %v2712_v26 = vld [vmem:[%s3515_s14 + $0x70] sm:$0xff]  }
0x1664   :  { %v1599_v7 = vmul.f32 1.442695, %v1596_v6  ;;  %2603 = vmatprep.subr.bf16.mxu0 %v2836_v40 }
0x1665   :  { %v1714_v8 = vpop.xlane.xlu0 %1713 }
0x1666   :  { %2783 = vpow2.f32 %v1599_v7  ;;  %v1718_v11 = vsub.f32 %v1706_v51, %v1714_v8 }
0x1667   :  { %v2778_v12 = vpop.eup %2777 }
0x1668   :  { %v1720_v14 = vmul.f32 1.442695, %v1718_v11  ;;  %v1478_v17 = vsel %vm385_vm5, %v2778_v12, 0.0 }
0x1669   :  { %1479 = vadd.xlane.f32.xlu0 %v1478_v17  ;;  %v1717_v15 = vpop.xlane.xlu1 %1716 }
0x166a   :  { %2785 = vpow2.f32 %v1720_v14  ;;  %v1719_v16 = vsub.f32 %v1709_v9, %v1717_v15 }
0x166b   :  { %v2780_v53 = vpop.eup %2779 }
0x166c   :  { %v1481_v18 = vsel %vm389_vm6, %v2780_v53, 0.0  ;;  %v1722_v24 = vmul.f32 1.442695, %v1719_v16 }
0x166d   :  { %1482 = vadd.xlane.f32.xlu1 %v1481_v18 }
0x166e   :  { %2787 = vpow2.f32 %v1722_v24 }
0x166f   :  { %v2782_v19 = vpop.eup %2781 }
0x1670   :  { %v1601_v20 = vsel %vm385_vm5, %v2782_v19, 0.0 }
0x1671   :  { %1602 = vadd.xlane.f32.xlu0 %v1601_v20 }
0x1673   :  { %v2784_v22 = vpop.eup %2783 }
0x1674   :  { %v1604_v23 = vsel %vm389_vm6, %v2784_v22, 0.0 }
0x1675   :  { %1605 = vadd.xlane.f32.xlu1 %v1604_v23 }
0x1677   :  { %v2786_v58 = vpop.eup %2785 }
0x1678   :  { %v1724_v13 = vsel %vm385_vm5, %v2786_v58, 0.0 }
0x1679   :  { %1725 = vadd.xlane.f32.xlu0 %v1724_v13 }
0x167b   :  { %v2788_v2 = vpop.eup %2787 }
0x167c   :  { %v1727_v25 = vsel %vm389_vm6, %v2788_v2, 0.0 }
0x1686   :  { %1612 = vrot.lane.b32.xlu1 %v3292_v50, %s3549_s30 }
0x168f   :  { %1489 = vrot.lane.b32.xlu0 %v3292_v50, %s3550_s4  ;;  %s2852_s4 = smov [#allocation2]  }
0x16aa   :  { %1728 = vadd.xlane.f32.xlu1 %v1727_v25 }
0x16bb   :  { %1735 = vrot.lane.b32.xlu1 %v3292_v50, %s3551_s29 }
0x16f2   :  { %v1480_v28 = vpop.xlane.xlu0 %1479 }
0x16f3   :  { %2789 = vrcp.f32 %v1480_v28 }
0x16f6   :  { %v1483_v30 = vpop.xlane.xlu1 %1482 }
0x16f7   :  { %2791 = vrcp.f32 %v1483_v30 }
0x16fa   :  { %v1603_v31 = vpop.xlane.xlu0 %1602 }
0x16fb   :  { %2793 = vrcp.f32 %v1603_v31 }
0x16fe   :  { %v1606_v32 = vpop.xlane.xlu1 %1605 }
0x16ff   :  { %2795 = vrcp.f32 %v1606_v32 }
0x1700   :  { %v2790_v34 = vpop.eup %2789 }
0x1701   :  { %v1486_v41 = vmul.f32 %v2790_v34, %v2778_v12 }
0x1702   :  { %v1726_v33 = vpop.xlane.xlu0 %1725  ;;  %v1613_v43 = vpop.permute.xlu1 %1612 }
0x1703   :  { %v1618_v45 = vsel %vm415_vm7, %v1613_v43, 0  ;;  %2797 = vrcp.f32 %v1726_v33 }
0x1704   :  { %v2792_v35 = vpop.eup %2791 }
0x1705   :  { %v1487_v36 = vmul.f32 %v2792_v35, %v2780_v53 }
0x1706   :  { %v1490_v37 = vpop.permute.xlu0 %1489 }
0x1707   :  { %v1495_v38 = vsel %vm415_vm7, %v1490_v37, 0  ;;  %v1488_v44 = vpack.c.bf16 %v1487_v36, %v1486_v41 }
0x1708   :  { %2558 = vmatpush3.bf16.msra.mxu1 %v1495_v38  ;;  %v2794_v50 = vpop.eup %2793 }
0x1709   :  { %2569 = vmatprep.subr.bf16.mxu1 %v2836_v40  ;;  %v1609_v48 = vmul.f32 %v2794_v50, %v2782_v19 }
0x170b   :  { %2560 = vmatmul.mubr.msk.bf16.vlgmr.msra.gmra.mxu1 %vm385_vm5, %v1488_v44 }
0x170c   :  { %v2796_v46 = vpop.eup %2795  ;;  %2570 = vmatpush3.bf16.msra.mxu1 %v1618_v45  ;;  %2571 = vmatprep.mubr.msk.bf16.mxu1 %vm2837_vm3, %v2836_v40 }
0x170d   :  { %v1610_v47 = vmul.f32 %v2796_v46, %v2784_v22  ;;  %2581 = vmatprep.subr.bf16.mxu1 %v2836_v40 }
0x170f   :  { %v1611_v49 = vpack.c.bf16 %v1610_v47, %v1609_v48 }
0x1710   :  { %v2798_v52 = vpop.eup %2797 }
0x1711   :  { %v1732_v54 = vmul.f32 %v2798_v52, %v2786_v58 }
0x1713   :  { %2572 = vmatmul.mubr.msk.bf16.vlgmr.msra.gmra.mxu1 %vm385_vm5, %v1611_v49 }
0x1714   :  { %2583 = vmatprep.mubr.msk.bf16.mxu1 %vm2837_vm3, %v2836_v40 }
0x1733   :  { %v1729_v39 = vpop.xlane.xlu1 %1728 }
0x1734   :  { %2799 = vrcp.f32 %v1729_v39  ;;  %v2710_v39 = vld [vmem:[%s3513_s12 + $0x10] sm:$0xff]  }
0x1737   :  { %v1736_v42 = vpop.permute.xlu1 %1735 }
0x1738   :  { %v1741_v51 = vsel %vm415_vm7, %v1736_v42, 0 }
0x1739   :  { %2582 = vmatpush3.bf16.msra.mxu1 %v1741_v51 }
0x173a   :  { %2595 = vmatprep.subr.bf16.mxu1 %v2836_v40 }
0x1741   :  { %v2800_v5 = vpop.eup %2799 }
0x1742   :  { %v1733_v55 = vmul.f32 %v2800_v5, %v2788_v2 }
0x1744   :  { %v1734_v9 = vpack.c.bf16 %v1733_v55, %v1732_v54 }
0x1746   :  { %2584 = vmatmul.mubr.msk.bf16.vlgmr.msra.gmra.mxu1 %vm385_vm5, %v1734_v9 }
0x1747   :  { %2599 = vmatprep.mubr.msk.bf16.mxu1 %vm2837_vm3, %v2836_v40 }
0x17cb   :  { %v1531_v56 = vpop.f32.mrf.mxu1 }
0x17cd   :  { %v2561_v57 = vpop.f32.mrf.mxu1 }
0x17ce   :  { %v2325_v57 = vld [vmem:[%s3511_s10 + $0x1] ss:$0 sm:$0xff] }
0x17cf   :  { %v1534_v59 = vpop.f32.mrf.mxu1 }
0x17d0   :  { %v2664_v61 = vpack.i.bf16 %v1534_v59, %v1531_v56 }
0x17d1   :  { %v2562_v62 = vpop.f32.mrf.mxu1 }
0x17d2   :  { %2665 = vrot.lane.b32.xlu1 %v2664_v61, %s3552_s3  ;;  %v2326_v62 = vld [vmem:[%s3512_s11 + $0x1] ss:$0 sm:$0xff]  ;;  %s2239_s11 = sshll.u32 %s2852_s4, 4  ;;  %s2240_s11 = int_to_ptr.vmem [resolvable:$true] %s2239_s11 }
0x17d3   :  { %v1654_v21 = vpop.f32.mrf.mxu1  ;;  %p2818_p1 = scmp.lt.s32.totalorder %s2240_s11, %s2240_s11 }
0x17d5   :  { %v2573_v63 = vpop.f32.mrf.mxu1 }
0x17d7   :  { %v1657_v0 = vpop.f32.mrf.mxu1 }
0x17d8   :  { %v2669_v1 = vpack.i.bf16 %v1657_v0, %v1654_v21 }
0x17d9   :  { %v2574_v3 = vpop.f32.mrf.mxu1 }
0x17da   :  { %2670 = vrot.lane.b32.xlu0 %v2669_v1, %s3553_s26  ;;  %v2711_v3 = vld [vmem:[%s3515_s14 + $0x78] sm:$0xff]  }
0x1806   :  { %v1777_v6 = vpop.f32.mrf.mxu1 }
0x1808   :  { %v2585_v7 = vpop.f32.mrf.mxu1 }
0x1809   :  { %v2714_v7 = vld [vmem:[%s3515_s14 + $0x60] sm:$0xff]  }
0x180a   :  { %v1780_v8 = vpop.f32.mrf.mxu1 }
0x180b   :  { %v2674_v11 = vpack.i.bf16 %v1780_v8, %v1777_v6  ;;  %v2713_v6 = vld [vmem:[%s3515_s14 + $0x68] sm:$0xff]   ;;  %v2715_v8 = vld [vmem:[%s3515_s14 + $0x58] sm:$0xff]  }
0x180c   :  { %v2586_v12 = vpop.f32.mrf.mxu1 }
0x180d   :  { %2675 = vrot.lane.b32.xlu1 %v2674_v11, %s3554_s21  ;;  %v2716_v11 = vld [vmem:[%s3515_s14 + $0x50] sm:$0xff]   ;;  %v2717_v12 = vld [vmem:[%s3515_s14 + $0x48] sm:$0xff]  }
0x1844   :  { %v2666_v14 = vpop.permute.xlu1 %2665 }
0x1845   :  { %v2668_v53 = vunpack.i.h.bf16 %v2666_v14  ;;  %v2667_v18 = vunpack.i.l.bf16 %v2666_v14  ;;  %v2718_v14 = vld [vmem:[%s3515_s14 + $0x40] sm:$0xff]  }
0x1847   :  { %v1809_v23 = vsel %vm337_vm4, %v3344_v29, %v2668_v53  ;;  %v1808_v58 = vsel %vm337_vm4, %v3342_v27, %v2667_v18  ;;  %v2319_v27 = vld [vmem:[%s3510_s9 + $0x1] ss:$0 sm:$0xff] }
0x184c   :  { %v2671_v17 = vpop.permute.xlu0 %2670 }
0x184d   :  { %v2673_v19 = vunpack.i.h.bf16 %v2671_v17  ;;  %v2672_v20 = vunpack.i.l.bf16 %v2671_v17  ;;  %v2332_v17 = vld [vmem:[%s3514_s13 + $0x1] ss:$0 sm:$0xff] }
0x184f   :  { %v1811_v16 = vsel %vm855_vm8, %v1809_v23, %v2673_v19  ;;  %v1810_v24 = vsel %vm855_vm8, %v1808_v58, %v2672_v20 }
0x187f   :  { %v2676_v22 = vpop.permute.xlu1 %2675 }
0x1880   :  { %v2678_v13 = vunpack.i.h.bf16 %v2676_v22  ;;  %v2677_v15 = vunpack.i.l.bf16 %v2676_v22 }
0x1882   :  { %v1813_v2 = vsel %vm858_vm9, %v1811_v16, %v2678_v13  ;;  %v1812_v25 = vsel %vm858_vm9, %v1810_v24, %v2677_v15 }
0x1883   :  { %v1814_v28 = vpack.c.bf16 %v1813_v2, %v1812_v25 }
0x1885   :  { %2592 = vmatmul.mubr.msk.bf16.vlgmr.msra.gmra.mxu0 %vm220_vm1, %v1814_v28 }
0x1886   :  { %2619 = vmatprep.mubr.msk.bf16.mxu0 %vm2837_vm3, %v2836_v40  ;;  %2604 = vmatpush3.bf16.msra.mxu0 %v2711_v3 }
0x1887   :  { %2605 = vmatprep.subr.bf16.mxu0 %v2836_v40 }
0x188a   :  { %2606 = vmatpush3.bf16.msra.mxu0 %v2712_v26 }
0x188b   :  { %2607 = vmatprep.subr.bf16.mxu0 %v2836_v40 }
0x188e   :  { %2608 = vmatpush3.bf16.msra.mxu0 %v2713_v6 }
0x188f   :  { %2609 = vmatprep.subr.bf16.mxu0 %v2836_v40 }
0x1892   :  { %2610 = vmatpush3.bf16.msra.mxu0 %v2714_v7 }
0x1893   :  { %2611 = vmatprep.subr.bf16.mxu0 %v2836_v40 }
0x1896   :  { %2612 = vmatpush3.bf16.msra.mxu0 %v2715_v8 }
0x1897   :  { %2613 = vmatprep.subr.bf16.mxu0 %v2836_v40 }
0x189a   :  { %2614 = vmatpush3.bf16.msra.mxu0 %v2716_v11 }
0x189b   :  { %2615 = vmatprep.subr.bf16.mxu0 %v2836_v40 }
0x189e   :  { %2616 = vmatpush3.bf16.msra.mxu0 %v2717_v12 }
0x189f   :  { %2617 = vmatprep.subr.bf16.mxu0 %v2836_v40 }
0x18a2   :  { %2618 = vmatpush3.bf16.msra.mxu0 %v2718_v14 }
0x1945   :  { %v1877_v29 = vpop.f32.mrf.mxu0 }
0x1946   :  { %v1878_v30 = vadd.f32 %v2319_v27, %v1877_v29 }
0x1947   :  { %v2593_v31 = vpop.f32.mrf.mxu0 }
0x1948   :  { %v3415_v32 = vadd.f32 %v1878_v30, %v3259_v4 }
0x1949   :  { %v1880_v33 = vpop.f32.mrf.mxu0 }
0x194a   :  { %v1881_v34 = vadd.f32 %v2319_v27, %v1880_v33  ;;  %v1890_v35 = vsel %vm220_vm1, %v3415_v32, 0.0 }
0x194b   :  { %1891 = vadd.xlane.f32.xlu0 %v1890_v35  ;;  %v2594_v36 = vpop.f32.mrf.mxu0 }
0x194c   :  { %v1885_v37 = vadd.f32 %v1881_v34, %v3264_v10  ;;  %v2709_v10 = vld [vmem:[%s3513_s12 + $0x18] sm:$0xff]  }
0x194d   :  { %2596 = vmatpush3.bf16.msra.mxu1 %v2709_v10 }
0x194e   :  { %v1893_v38 = vsel %vm224_vm2, %v1885_v37, 0.0  ;;  %2597 = vmatprep.subr.bf16.mxu1 %v2836_v40 }
0x194f   :  { %1894 = vadd.xlane.f32.xlu1 %v1893_v38 }
0x1951   :  { %2598 = vmatpush3.bf16.msra.mxu1 %v2710_v39 }
0x1952   :  { %2623 = vmatprep.subr.bf16.mxu1 %v2836_v40 }
0x19d4   :  { %v1892_v41 = vpop.xlane.xlu0 %1891 }
0x19d5   :  { %v1896_v43 = vmul.f32 0.03125, %v1892_v41 }
0x19d7   :  { %v1898_v44 = vsub.f32 %v3415_v32, %v1896_v43  ;;  %v2353_v43 = vld [vmem:[%s3516_s15 + $0x1] ss:$0 sm:$0xff] }
0x19d8   :  { %v1895_v50 = vpop.xlane.xlu1 %1894 }
0x19d9   :  { %v1897_v45 = vmul.f32 0.03125, %v1895_v50  ;;  %v1900_v4 = vmul.f32 %v1898_v44, %v1898_v44 }
0x19db   :  { %v1899_v46 = vsub.f32 %v1885_v37, %v1897_v45  ;;  %v1902_v47 = vsel %vm220_vm1, %v1900_v4, 0.0 }
0x19dc   :  { %1903 = vadd.xlane.f32.xlu0 %v1902_v47 }
0x19dd   :  { %v1901_v48 = vmul.f32 %v1899_v46, %v1899_v46 }
0x19df   :  { %v1905_v49 = vsel %vm224_vm2, %v1901_v48, 0.0 }
0x19e0   :  { %1906 = vadd.xlane.f32.xlu0 %v1905_v49 }
0x1a65   :  { %v1904_v42 = vpop.xlane.xlu0 %1903 }
0x1a66   :  { %v1908_v51 = vmul.f32 0.03125, %v1904_v42 }
0x1a68   :  { %v1910_v52 = vadd.f32 1e-12, %v1908_v51 }
0x1a69   :  { %v1907_v5 = vpop.xlane.xlu0 %1906 }
0x1a6a   :  { %2801 = vrsqrt.f32 %v1910_v52  ;;  %v1909_v54 = vmul.f32 0.03125, %v1907_v5  ;;  %v2719_v52 = vld [vmem:[%s3519_s18 + $0x8] sm:$0xff]  }
0x1a6c   :  { %v1911_v55 = vadd.f32 1e-12, %v1909_v54 }
0x1a6e   :  { %2803 = vrsqrt.f32 %v1911_v55 }
0x1a77   :  { %v2802_v9 = vpop.eup %2801 }
0x1a78   :  { %v1914_v56 = vmul.f32 %v2802_v9, %v1898_v44 }
0x1a7a   :  { %v1922_v61 = vmul.f32 %v2325_v57, %v1914_v56  ;;  %v2362_v56 = vld [vmem:[%s3517_s16] ss:$0 sm:$0xff]  ;;  %s2813_s16 = scalar_lea.vmem %s2240_s11, 32 }
0x1a7b   :  { %v2804_v59 = vpop.eup %2803  ;;  %p2814_p0 = scmp.ne.s32.totalorder %s2240_s11, %s2813_s16  ;;  %p2819_p2 = scmp.lt.s32.totalorder %s2813_s16, %s2813_s16 }
0x1a7c   :  { %v1915_v60 = vmul.f32 %v2804_v59, %v1899_v46  ;;  %v1930_v63 = vadd.f32 %v2326_v62, %v1922_v61  ;;  %v2363_v59 = vld [vmem:[%s3518_s17] ss:$0 sm:$0xff] }
0x1a7d   :  { %p2820_p3 = por %p2819_p2, %p2818_p1 }
0x1a7e   :  { %v1923_v21 = vmul.f32 %v2325_v57, %v1915_v60 }
0x1a7f   :  { %p2821_p4 = pnand %p2820_p3, %p2814_p0 }
0x1a80   :  { %v1931_v0 = vadd.f32 %v2326_v62, %v1923_v21 }
0x1a82   :  { %v1932_v1 = vpack.c.bf16 %v1931_v0, %v1930_v63 }
0x1a84   :  { %2600 = vmatmul.mubr.msk.bf16.vlgmr.msra.gmra.mxu1 %vm220_vm1, %v1932_v1 }
0x1a85   :  { %2627 = vmatprep.mubr.msk.bf16.mxu1 %vm2837_vm3, %v2836_v40  ;;  %2624 = vmatpush3.bf16.msra.mxu1 %v2719_v52 }
0x1a86   :  { %2625 = vmatprep.subr.bf16.mxu1 %v2836_v40  ;;  %v2364_v40 = vld [vmem:[%s3520_s19] ss:$0 sm:$0xff] }
0x1b44   :  { %v1995_v53 = vpop.f32.mrf.mxu1 }
0x1b45   :  { %v1996_v18 = vadd.f32 %v2332_v17, %v1995_v53 }
0x1b46   :  { %v2601_v19 = vpop.f32.mrf.mxu1 }
0x1b47   :  { %v2004_v20 = vmul.f32 0.044715, %v1996_v18  ;;  %v2002_v34 = vmul.f32 0.5, %v1996_v18 }
0x1b48   :  { %v1998_v22 = vpop.f32.mrf.mxu1 }
0x1b49   :  { %v2006_v23 = vmul.f32 %v2004_v20, %v1996_v18  ;;  %v1999_v58 = vadd.f32 %v2332_v17, %v1998_v22 }
0x1b4a   :  { %v2602_v13 = vpop.f32.mrf.mxu1 }
0x1b4b   :  { %v2008_v15 = vmul.f32 %v2006_v23, %v1996_v18  ;;  %v2005_v16 = vmul.f32 0.044715, %v1999_v58  ;;  %v2003_v35 = vmul.f32 0.5, %v1999_v58 }
0x1b4d   :  { %v2010_v24 = vadd.f32 %v2008_v15, %v1996_v18  ;;  %v2007_v2 = vmul.f32 %v2005_v16, %v1999_v58 }
0x1b4f   :  { %v2012_v25 = vmul.f32 0.7978846, %v2010_v24  ;;  %v2009_v28 = vmul.f32 %v2007_v2, %v1999_v58 }
0x1b51   :  { %2805 = vtanh.f32 %v2012_v25  ;;  %v2011_v27 = vadd.f32 %v2009_v28, %v1999_v58 }
0x1b53   :  { %v2013_v29 = vmul.f32 0.7978846, %v2011_v27 }
0x1b55   :  { %2807 = vtanh.f32 %v2013_v29 }
0x1b5e   :  { %v2806_v30 = vpop.eup %2805 }
0x1b5f   :  { %v2016_v31 = vadd.f32 1.0, %v2806_v30 }
0x1b61   :  { %v2018_v37 = vmul.f32 %v2016_v31, %v2002_v34 }
0x1b62   :  { %v2808_v33 = vpop.eup %2807 }
0x1b63   :  { %v2017_v36 = vadd.f32 1.0, %v2808_v33 }
0x1b65   :  { %v2019_v38 = vmul.f32 %v2017_v36, %v2003_v35 }
0x1b67   :  { %v2020_v41 = vpack.c.bf16 %v2019_v38, %v2018_v37 }
0x1b69   :  { %2620 = vmatmul.mubr.bf16.vlgmr.msra.gmra.mxu0 %v2020_v41 }
0x1c29   :  { %v2128_v44 = vpop.f32.mrf.mxu0 }
0x1c2a   :  { %v2129_v50 = vadd.f32 %v2353_v43, %v2128_v44 }
0x1c2b   :  { %v2621_v45 = vpop.f32.mrf.mxu0 }
0x1c2c   :  { %v2134_v4 = vadd.f32 %v2129_v50, %v3415_v32  ;;  %v2720_v32 = vld [vmem:[%s3519_s18] sm:$0xff]  }
0x1c2d   :  { %v2131_v46 = vpop.f32.mrf.mxu0  ;;  %2626 = vmatpush3.bf16.msra.mxu1 %v2720_v32 }
0x1c2e   :  { %v2137_v47 = vsel %vm224_vm2, %v2134_v4, 0.0 }
0x1c2f   :  { %2138 = vadd.xlane.f32.xlu0 %v2137_v47  ;;  %v2622_v48 = vpop.f32.mrf.mxu0 }
0x1cb8   :  { %v2139_v49 = vpop.xlane.xlu0 %2138 }
0x1cb9   :  { %v2140_v10 = vmul.f32 0.03125, %v2139_v49 }
0x1cbb   :  { %v2141_v39 = vsub.f32 %v2134_v4, %v2140_v10 }
0x1cbd   :  { %v2142_v42 = vmul.f32 %v2141_v39, %v2141_v39 }
0x1cbf   :  { %v2143_v51 = vsel %vm224_vm2, %v2142_v42, 0.0 }
0x1cc0   :  { %2144 = vadd.xlane.f32.xlu1 %v2143_v51 }
0x1d49   :  { %v2145_v5 = vpop.xlane.xlu1 %2144 }
0x1d4a   :  { %v2146_v54 = vmul.f32 0.03125, %v2145_v5 }
0x1d4c   :  { %v2147_v55 = vadd.f32 1e-12, %v2146_v54 }
0x1d4e   :  { %2809 = vrsqrt.f32 %v2147_v55 }
0x1d5b   :  { %v2810_v9 = vpop.eup %2809 }
0x1d5c   :  { %v2149_v57 = vmul.f32 %v2810_v9, %v2141_v39 }
0x1d5e   :  { %v2156_v60 = vmul.f32 %v2362_v56, %v2149_v57 }
0x1d60   :  { %v2163_v61 = vadd.f32 %v2363_v59, %v2156_v60 }
0x1d62   :  { %v2164_v62 = vpack.c.bf16 %v2163_v61, %v2163_v61 }
0x1d64   :  { %2628 = vmatmul.mubr.msk.bf16.vlgmr.msra.gmra.mxu1 %vm220_vm1, %v2164_v62 }
0x1e24   :  { %v2225_v21 = vpop.f32.mrf.mxu1 }
0x1e25   :  { %v2226_v63 = vadd.f32 %v2364_v40, %v2225_v21 }
0x1e26   :  { %v2629_v0 = vpop.f32.mrf.mxu1 }
0x1e27   :  { %2232 = vst.msk [vmem:[#allocation2] sm:$0x3] %vm2231_vm10, %v2226_v63 }
0x1e28   :  { %v2228_v1 = vpop.f32.mrf.mxu1 }
0x1e29   :  { %2824 = shalt.err (!%p2821_p4)
}
0x1e2a   :  { %2242 = dma.vmem_to_hbm [thread:$0]  %s2240_s11, 32, %s3521_s20, [#allocation3]   ;;  %v2630_v3 = vpop.f32.mrf.mxu1 }
0x1e2b   :  { %2833 = dma.done.wait [#allocation3], 32  }
0x1e2c   :  { %2834 = vsyncadd [#allocation3], 4294967264 }
0x1e2d   :  { %2246 = vsyncpa [#allocation3], 1 }

</bundles_post_ra>
